<compile_context>
chip_gen: v6e
topology: v6e:2x2x1
jax: 0.10.0
libtpu: 0.0.40
codegen_flags: <defaults>
</compile_context>

<pallas_src>
import jax
import jax.numpy as jnp
from jax.experimental import pallas as pl
from jax.experimental.pallas import tpu as pltpu

# ---- module configuration (fused lane layout assumes these are all 32) ----
NODE_DIM = 32
EDGE_DIM = 32
BOND_DIM = 32          # > 0 so the bond branch is active
GATE_HID = 32          # BondFFN gate MLP hidden width (fixed to 32 in the spec)
F = 32                 # common feature width
assert NODE_DIM == EDGE_DIM == BOND_DIM == GATE_HID == F
LANES = 128            # full lane width of every packed operand
RP = 128               # padded edge/bond row-slab (= scatter contraction depth)
W_ROWS = 9 * LANES + 8  # 9 fused (128,128) weight matrices + 8 aux (bias) rows


# ----------------------------- parameter init -----------------------------
def init_params(key):
    ks = iter(jax.random.split(key, 40))

    def w(shape):
        return jax.random.normal(next(ks), shape, jnp.float32) / jnp.sqrt(shape[0])

    def b(shape):
        return 0.02 * jax.random.normal(next(ks), shape, jnp.float32)

    p = {}
    # left/right node->feature MLPs for the edge ("le","re") and bond ("lb","rb") branches
    for name in ("le", "re", "lb", "rb"):
        p[f"{name}_W1"], p[f"{name}_b1"] = w((NODE_DIM, F)), b((F,))
        p[f"{name}_W2"], p[f"{name}_b2"] = w((F, F)), b((F,))
    # BondFFN(feat_dim, feat_dim, node_dim, use_gate=True, out_dim=1): edges "eb", bonds "bb"
    for name in ("eb", "bb"):
        p[f"{name}_Wb"] = w((F, NODE_DIM))                      # bond_linear (no bias)
        p[f"{name}_Wn"] = w((F, NODE_DIM))                      # node_linear (no bias)
        p[f"{name}_Wm1"], p[f"{name}_bm1"] = w((NODE_DIM, NODE_DIM)), b((NODE_DIM,))
        p[f"{name}_Wm2"], p[f"{name}_bm2"] = w((NODE_DIM, 1)), b((1,))
        p[f"{name}_Wg1"], p[f"{name}_bg1"] = w((2 * F + 1, GATE_HID)), b((GATE_HID,))
        p[f"{name}_Wg2"], p[f"{name}_bg2"] = w((GATE_HID, 1)), b((1,))
    return p


# ----------------------------- weight packing -----------------------------
def pack_weights(p):
    """Fuse all weights into one (1160, 128) buffer: 9 full (128,128) matrices + biases.

    Lane conventions (all chosen so cross-branch pairing is a shift-64 roll):
      fpair  : [lf_e | lf_b | rf_e | rf_b]
      u      : [ub_e | ub_b | un_e | un_b]
      hidden : [m_e  | m_b  | g_e  | g_b ]   (after m_hid + roll(g_hid, 64))
      v      : lanes 0/1 = inter-MLP out (e/b), lanes 64/65 = gate out (e/b)
    """
    f32 = jnp.float32
    z = lambda: jnp.zeros((LANES, LANES), f32)

    W1, W2 = z(), z()
    for k, name in enumerate(("le", "lb", "re", "rb")):        # left halves first, right last
        W1 = W1.at[32 * k:32 * k + 32, 32 * k:32 * k + 32].set(p[f"{name}_W1"])
        W2 = W2.at[32 * k:32 * k + 32, 32 * k:32 * k + 32].set(p[f"{name}_W2"])
    # bond_linear (consumes edge_h / h_bond lanes) and node_linear (consumes nf lanes)
    W3a = z().at[0:32, 0:32].set(p["eb_Wb"]).at[32:64, 32:64].set(p["bb_Wb"])
    W3b = z().at[0:32, 64:96].set(p["eb_Wn"]).at[32:64, 96:128].set(p["bb_Wn"])
    Wm1 = z().at[0:32, 0:32].set(p["eb_Wm1"]).at[32:64, 32:64].set(p["bb_Wm1"])
    Wg1a = z().at[0:32, 0:32].set(p["eb_Wg1"][0:32]).at[32:64, 32:64].set(p["bb_Wg1"][0:32])
    Wg1b = z().at[0:32, 0:32].set(p["eb_Wg1"][32:64]).at[32:64, 32:64].set(p["bb_Wg1"][32:64])
    W4 = z()
    W4 = W4.at[0:32, 0:1].set(p["eb_Wm2"]).at[32:64, 1:2].set(p["bb_Wm2"])
    W4 = W4.at[64:96, 64:65].set(p["eb_Wg2"]).at[96:128, 65:66].set(p["bb_Wg2"])
    # Bsel broadcasts the per-row scalar weights onto the 3 position lanes (edge -> 0:3,
    # bond -> 64:67); rows >= 2 are zero so garbage lanes of w never contribute.
    Bsel = z().at[0, 0:3].set(1.0).at[1, 64:67].set(1.0)

    aux = jnp.zeros((8, LANES), f32)
    aux = aux.at[0].set(jnp.concatenate([p["le_b1"], p["lb_b1"], p["re_b1"], p["rb_b1"]]))
    aux = aux.at[1].set(jnp.concatenate([p["le_b2"], p["lb_b2"], p["re_b2"], p["rb_b2"]]))
    aux = aux.at[2, 0:64].set(jnp.concatenate([p["eb_bm1"], p["bb_bm1"]]))
    aux = aux.at[3, 0:64].set(jnp.concatenate([p["eb_bg1"], p["bb_bg1"]]))
    aux = aux.at[4, 0:64].set(jnp.concatenate([p["eb_Wg1"][64], p["bb_Wg1"][64]]))  # time row
    aux = aux.at[5, 0:2].set(jnp.concatenate([p["eb_bm2"], p["bb_bm2"]]))
    aux = aux.at[5, 64:66].set(jnp.concatenate([p["eb_bg2"], p["bb_bg2"]]))

    wp = jnp.concatenate([W1, W2, W3a, W3b, Wm1, Wg1a, Wg1b, W4, Bsel, aux], axis=0)
    assert wp.shape == (W_ROWS, LANES)
    return wp


# ----------------------------- Pallas wrapper + kernel -----------------------------
@jax.jit
def pos_predictor(params, node_h, node_pos, h_bond, bond_index, edge_h, edge_index,
                  is_frag, edge_time, bond_time):
    f32 = jnp.float32
    N = node_h.shape[0]
    n_edges, n_bonds = edge_h.shape[0], h_bond.shape[0]
    NP = -(-N // 8) * 8                      # 8-aligned node row count
    assert 4 * N <= LANES, "lane-fused packing supports at most 32 nodes (see TODO(synk))"
    assert max(n_edges, n_bonds) <= RP, "row slab supports at most 128 edges/bonds"

    def pad_rows(x, rows):
        return jnp.zeros((rows,) + x.shape[1:], x.dtype).at[: x.shape[0]].set(x)

    # ---- index-derived glue: one-hot gather / diff / (masked) scatter matrices ----
    el, er = pad_rows(edge_index[0], RP), pad_rows(edge_index[1], RP)
    bl, br = pad_rows(bond_index[0], RP), pad_rows(bond_index[1], RP)
    oh = lambda idx: jax.nn.one_hot(idx, N, dtype=f32)                  # (RP, N)
    oh_el, oh_er, oh_bl, oh_br = oh(el), oh(er), oh(bl), oh(br)
    mask_e = pad_rows(is_frag.astype(f32)[edge_index[0]], RP)           # 0 on pad rows
    mask_b = pad_rows(is_frag.astype(f32)[bond_index[0]], RP)

    # edge/bond features + broadcast time columns: [edge_h | h_bond | t_e x32 | t_b x32]
    ehb = jnp.zeros((RP, LANES), f32)
    ehb = ehb.at[:n_edges, 0:32].set(edge_h)
    ehb = ehb.at[:n_bonds, 32:64].set(h_bond)
    ehb = ehb.at[:n_edges, 64:96].set(jnp.broadcast_to(edge_time, (n_edges, 32)))
    ehb = ehb.at[:n_bonds, 96:128].set(jnp.broadcast_to(bond_time, (n_bonds, 32)))

    # gather routing: lanes [oh(el) | oh(bl) | oh(er) | oh(br)] at 32-lane block starts
    gcat = jnp.zeros((RP, LANES), f32)
    gcat = gcat.at[:, 0:N].set(oh_el).at[:, 32:32 + N].set(oh_bl)
    gcat = gcat.at[:, 64:64 + N].set(oh_er).at[:, 96:96 + N].set(oh_br)

    # position-difference routing: edge diff on lanes 0:N, bond diff on lanes 64:64+N
    dmat = jnp.zeros((RP, LANES), f32)
    dmat = dmat.at[:, 0:N].set(oh_el - oh_er).at[:, 64:64 + N].set(oh_bl - oh_br)

    # masked scatter matrices (is_frag compaction + pad rows folded in -> contribute 0)
    scat_e = jnp.zeros((NP, LANES), f32).at[0:N, :].set((oh_el * mask_e[:, None]).T)
    scat_b = jnp.zeros((NP, LANES), f32).at[0:N, :].set((oh_bl * mask_b[:, None]).T)

    # node-feature table, block-diagonal on 32-lane blocks (rows padded to 128)
    nh = jnp.zeros((LANES, LANES), f32)
    for k in range(4):
        nh = nh.at[32 * k:32 * k + N, 32 * k:32 * k + 32].set(node_h)
    # node-position table: edge copy at rows 0:N / lanes 0:3, bond copy at 64:64+N / 64:67
    nposd = jnp.zeros((LANES, LANES), f32)
    nposd = nposd.at[0:N, 0:3].set(node_pos).at[64:64 + N, 64:67].set(node_pos)
    npos_out = jnp.zeros((NP, LANES), f32).at[0:N, 0:3].set(node_pos)

    # single activation-side buffer; every segment starts on an 8-row boundary
    dpack = jnp.concatenate([ehb, gcat, dmat, scat_e, scat_b, nh, nposd, npos_out], axis=0)
    wpack = pack_weights(params)

    OSE = 3 * RP                   # scat_e
    OSB = OSE + NP                 # scat_b
    ONH = OSB + NP                 # node-feature table
    OND = ONH + LANES              # node-position table
    OPO = OND + LANES              # output position base
    D_ROWS = OPO + NP

    def kernel(dp_ref, wp_ref, out_ref):
        # ---- data: full 128-lane views, all 8-aligned row offsets, no lane slices ----
        ehb_v = dp_ref[0:RP, :]
        gcat_v = dp_ref[RP:2 * RP, :]
        dmat_v = dp_ref[2 * RP:3 * RP, :]
        scate_v = dp_ref[OSE:OSE + NP, :]
        scatb_v = dp_ref[OSB:OSB + NP, :]
        nh_v = dp_ref[ONH:ONH + LANES, :]
        nposd_v = dp_ref[OND:OND + LANES, :]
        npos_v = dp_ref[OPO:OPO + NP, :]
        # ---- fused weights ----
        W1 = wp_ref[0:128, :]
        W2 = wp_ref[128:256, :]
        W3a = wp_ref[256:384, :]
        W3b = wp_ref[384:512, :]
        Wm1 = wp_ref[512:640, :]
        Wg1a = wp_ref[640:768, :]
        Wg1b = wp_ref[768:896, :]
        W4 = wp_ref[896:1024, :]
        Bsel = wp_ref[1024:1152, :]
        aux = wp_ref[1152:1160, :]
        b1, b2 = aux[0:1, :], aux[1:2, :]
        bm1, bg1 = aux[2:3, :], aux[3:4, :]
        tvec, b4 = aux[4:5, :], aux[5:6, :]

        dot = lambda a, w: jnp.dot(a, w, preferred_element_type=jnp.float32)
        relu = lambda x: jnp.maximum(x, 0.0)
        sigm = lambda x: 1.0 / (1.0 + jnp.exp(-x))
        roll64 = lambda x: pltpu.roll(x, 64, axis=1)   # pair halves across the 64-lane split

        # gather node features: [nh[el] | nh[bl] | nh[er] | nh[br]]          (128,128)
        xg = dot(gcat_v, nh_v)
        # fused left/right lin_edge & lin_bond MLPs -> [lf_e | lf_b | rf_e | rf_b]
        fpair = dot(relu(dot(xg, W1) + b1), W2) + b2
        nf = fpair * roll64(fpair)                     # [nf_e | nf_b | dup | dup]

        # both BondFFN branches, lane-fused
        u = dot(ehb_v, W3a) + dot(nf, W3b)             # [ub_e | ub_b | un_e | un_b]
        inter = u * roll64(u)                          # [i_e  | i_b  | dup | dup ]
        m_hid = relu(dot(inter, Wm1) + bm1)            # [m_e  | m_b  |  0  |  0  ]
        g_hid = relu(dot(ehb_v, Wg1a) + dot(nf, Wg1b)  # gate hidden (+ time term via roll)
                     + roll64(ehb_v) * tvec + bg1)     # [g_e  | g_b  |  0  |  0  ]
        v = dot(m_hid + roll64(g_hid), W4) + b4        # lanes 0/1 inter-out, 64/65 gate-out
        w = v * sigm(roll64(v))                        # lane 0 = w_e, lane 1 = w_b
        wsel = dot(w, Bsel)                            # w_e on lanes 0:3, w_b on lanes 64:67

        # force = weight * (pos_left - pos_right); masked scatter-sum; position update
        force = dot(dmat_v, nposd_v) * wsel            # edge force 0:3, bond force 64:67
        delta_e = dot(scate_v, force)                  # edge delta on lanes 0:3
        delta_b = dot(scatb_v, force)                  # bond delta on lanes 64:67
        out_ref[...] = npos_v + (delta_e + roll64(delta_b)) * 0.1   # single unmasked store

    out = pl.pallas_call(
        kernel,
        out_shape=jax.ShapeDtypeStruct((NP, LANES), f32),
        in_specs=[pl.BlockSpec(memory_space=pltpu.MemorySpace.VMEM),
                  pl.BlockSpec(memory_space=pltpu.MemorySpace.VMEM)],
        out_specs=pl.BlockSpec(memory_space=pltpu.MemorySpace.VMEM),
    )(dpack, wpack)
    assert dpack.shape[0] == D_ROWS
    return out[:N, :3]


# ----------------------------- pure-JAX reference -----------------------------
def _mlp(x, W1, b1, W2, b2):
    return jnp.maximum(x @ W1 + b1, 0.0) @ W2 + b2


def _bond_ffn(p, pref, bond_in, node_in, time):
    inter = (bond_in @ p[f"{pref}_Wb"]) * (node_in @ p[f"{pref}_Wn"])
    inter = _mlp(inter, p[f"{pref}_Wm1"], p[f"{pref}_bm1"], p[f"{pref}_Wm2"], p[f"{pref}_bm2"])
    gate = _mlp(jnp.concatenate([bond_in, node_in, time], axis=-1),
                p[f"{pref}_Wg1"], p[f"{pref}_bg1"], p[f"{pref}_Wg2"], p[f"{pref}_bg2"])
    return inter * (1.0 / (1.0 + jnp.exp(-gate)))


def pos_predictor_ref(p, node_h, node_pos, h_bond, bond_index, edge_h, edge_index,
                      is_frag, edge_time, bond_time):
    n = node_h.shape[0]
    # edge branch
    sel = is_frag[edge_index[0]]
    el, er = edge_index[0][sel], edge_index[1][sel]
    lf = _mlp(node_h[el], p["le_W1"], p["le_b1"], p["le_W2"], p["le_b2"])
    rf = _mlp(node_h[er], p["re_W1"], p["re_b1"], p["re_W2"], p["re_b2"])
    w_e = _bond_ffn(p, "eb", edge_h[sel], lf * rf, edge_time[sel])
    delta = jax.ops.segment_sum(w_e * (node_pos[el] - node_pos[er]), el, num_segments=n)
    # bond branch
    sel = is_frag[bond_index[0]]
    bl, br = bond_index[0][sel], bond_index[1][sel]
    lf = _mlp(node_h[bl], p["lb_W1"], p["lb_b1"], p["lb_W2"], p["lb_b2"])
    rf = _mlp(node_h[br], p["rb_W1"], p["rb_b1"], p["rb_W2"], p["rb_b2"])
    w_b = _bond_ffn(p, "bb", h_bond[sel], lf * rf, bond_time[sel])
    delta = delta + jax.ops.segment_sum(w_b * (node_pos[bl] - node_pos[br]), bl, num_segments=n)
    return node_pos + delta / 10.0


# ----------------------------- main -----------------------------
if __name__ == "__main__":
    key = jax.random.PRNGKey(0)
    kp, k1, k2, k3, k4, k5, k6, k7, k8, k9 = jax.random.split(key, 10)

    N_NODES, N_EDGES, N_BONDS = 8, 16, 12
    params = init_params(kp)
    node_h = jax.random.normal(k1, (N_NODES, NODE_DIM), jnp.float32)
    node_pos = jax.random.normal(k2, (N_NODES, 3), jnp.float32)
    h_bond = jax.random.normal(k3, (N_BONDS, BOND_DIM), jnp.float32)
    edge_h = jax.random.normal(k4, (N_EDGES, EDGE_DIM), jnp.float32)
    bond_index = jax.random.randint(k5, (2, N_BONDS), 0, N_NODES, dtype=jnp.int32)
    edge_index = jax.random.randint(k6, (2, N_EDGES), 0, N_NODES, dtype=jnp.int32)
    is_frag = jax.random.bernoulli(k7, 0.6, (N_NODES,))
    edge_time = jax.random.uniform(k8, (N_EDGES, 1), jnp.float32)
    bond_time = jax.random.uniform(k9, (N_BONDS, 1), jnp.float32)

    out = jax.block_until_ready(
        pos_predictor(params, node_h, node_pos, h_bond, bond_index,
                      edge_h, edge_index, is_frag, edge_time, bond_time))
    ref = jax.block_until_ready(
        pos_predictor_ref(params, node_h, node_pos, h_bond, bond_index,
                          edge_h, edge_index, is_frag, edge_time, bond_time))

    assert out.shape == (N_NODES, 3)
    err = float(jnp.max(jnp.abs(out - ref)))
    assert jnp.allclose(out, ref, rtol=2e-4, atol=2e-4), err
    print("KERNEL_OK")
</pallas_src>

<mosaic_0001>
module attributes {stable_mosaic.version = 11 : i64} {
  func.func @kernel(%arg0: memref<664x128xf32, #tpu.memory_space<vmem>>, %arg1: memref<1160x128xf32, #tpu.memory_space<vmem>>, %arg2: memref<8x128xf32, #tpu.memory_space<vmem>>) attributes {dimension_semantics = [], scalar_prefetch = 0 : i64, scratch_operands = 0 : i64, tpu.core_type = #tpu.core_type<tc>} {
    %c0 = arith.constant 0 : index
    %c0_0 = arith.constant 0 : index
    %0 = vector.load %arg0[%c0, %c0_0] : memref<664x128xf32, #tpu.memory_space<vmem>>, vector<128x128xf32>
    %c128 = arith.constant 128 : index
    %c0_1 = arith.constant 0 : index
    %1 = vector.load %arg0[%c128, %c0_1] : memref<664x128xf32, #tpu.memory_space<vmem>>, vector<128x128xf32>
    %c256 = arith.constant 256 : index
    %c0_2 = arith.constant 0 : index
    %2 = vector.load %arg0[%c256, %c0_2] : memref<664x128xf32, #tpu.memory_space<vmem>>, vector<128x128xf32>
    %c384 = arith.constant 384 : index
    %c0_3 = arith.constant 0 : index
    %3 = vector.load %arg0[%c384, %c0_3] : memref<664x128xf32, #tpu.memory_space<vmem>>, vector<8x128xf32>
    %c392 = arith.constant 392 : index
    %c0_4 = arith.constant 0 : index
    %4 = vector.load %arg0[%c392, %c0_4] : memref<664x128xf32, #tpu.memory_space<vmem>>, vector<8x128xf32>
    %c400 = arith.constant 400 : index
    %c0_5 = arith.constant 0 : index
    %5 = vector.load %arg0[%c400, %c0_5] : memref<664x128xf32, #tpu.memory_space<vmem>>, vector<128x128xf32>
    %c528 = arith.constant 528 : index
    %c0_6 = arith.constant 0 : index
    %6 = vector.load %arg0[%c528, %c0_6] : memref<664x128xf32, #tpu.memory_space<vmem>>, vector<128x128xf32>
    %c656 = arith.constant 656 : index
    %c0_7 = arith.constant 0 : index
    %7 = vector.load %arg0[%c656, %c0_7] : memref<664x128xf32, #tpu.memory_space<vmem>>, vector<8x128xf32>
    %c0_8 = arith.constant 0 : index
    %c0_9 = arith.constant 0 : index
    %8 = vector.load %arg1[%c0_8, %c0_9] : memref<1160x128xf32, #tpu.memory_space<vmem>>, vector<128x128xf32>
    %c128_10 = arith.constant 128 : index
    %c0_11 = arith.constant 0 : index
    %9 = vector.load %arg1[%c128_10, %c0_11] : memref<1160x128xf32, #tpu.memory_space<vmem>>, vector<128x128xf32>
    %c256_12 = arith.constant 256 : index
    %c0_13 = arith.constant 0 : index
    %10 = vector.load %arg1[%c256_12, %c0_13] : memref<1160x128xf32, #tpu.memory_space<vmem>>, vector<128x128xf32>
    %c384_14 = arith.constant 384 : index
    %c0_15 = arith.constant 0 : index
    %11 = vector.load %arg1[%c384_14, %c0_15] : memref<1160x128xf32, #tpu.memory_space<vmem>>, vector<128x128xf32>
    %c512 = arith.constant 512 : index
    %c0_16 = arith.constant 0 : index
    %12 = vector.load %arg1[%c512, %c0_16] : memref<1160x128xf32, #tpu.memory_space<vmem>>, vector<128x128xf32>
    %c640 = arith.constant 640 : index
    %c0_17 = arith.constant 0 : index
    %13 = vector.load %arg1[%c640, %c0_17] : memref<1160x128xf32, #tpu.memory_space<vmem>>, vector<128x128xf32>
    %c768 = arith.constant 768 : index
    %c0_18 = arith.constant 0 : index
    %14 = vector.load %arg1[%c768, %c0_18] : memref<1160x128xf32, #tpu.memory_space<vmem>>, vector<128x128xf32>
    %c896 = arith.constant 896 : index
    %c0_19 = arith.constant 0 : index
    %15 = vector.load %arg1[%c896, %c0_19] : memref<1160x128xf32, #tpu.memory_space<vmem>>, vector<128x128xf32>
    %c1024 = arith.constant 1024 : index
    %c0_20 = arith.constant 0 : index
    %16 = vector.load %arg1[%c1024, %c0_20] : memref<1160x128xf32, #tpu.memory_space<vmem>>, vector<128x128xf32>
    %c1152 = arith.constant 1152 : index
    %c0_21 = arith.constant 0 : index
    %17 = vector.load %arg1[%c1152, %c0_21] : memref<1160x128xf32, #tpu.memory_space<vmem>>, vector<8x128xf32>
    %18 = vector.extract_strided_slice %17 {offsets = [0, 0], sizes = [1, 128], strides = [1, 1]} : vector<8x128xf32> to vector<1x128xf32>
    %19 = vector.extract_strided_slice %17 {offsets = [1, 0], sizes = [1, 128], strides = [1, 1]} : vector<8x128xf32> to vector<1x128xf32>
    %20 = vector.extract_strided_slice %17 {offsets = [2, 0], sizes = [1, 128], strides = [1, 1]} : vector<8x128xf32> to vector<1x128xf32>
    %21 = vector.extract_strided_slice %17 {offsets = [3, 0], sizes = [1, 128], strides = [1, 1]} : vector<8x128xf32> to vector<1x128xf32>
    %22 = vector.extract_strided_slice %17 {offsets = [4, 0], sizes = [1, 128], strides = [1, 1]} : vector<8x128xf32> to vector<1x128xf32>
    %23 = vector.extract_strided_slice %17 {offsets = [5, 0], sizes = [1, 128], strides = [1, 1]} : vector<8x128xf32> to vector<1x128xf32>
    %cst = arith.constant dense<0.000000e+00> : vector<128x128xf32>
    %24 = tpu.matmul %1, %5, %cst {dimension_numbers = #tpu.dot_dimension_numbers<[1], [0], [0], [1], [0, 0, 1, 1], [], []>} : vector<128x128xf32>, vector<128x128xf32>, vector<128x128xf32> -> vector<128x128xf32>
    %cst_22 = arith.constant dense<0.000000e+00> : vector<128x128xf32>
    %25 = tpu.matmul %24, %8, %cst_22 {dimension_numbers = #tpu.dot_dimension_numbers<[1], [0], [0], [1], [0, 0, 1, 1], [], []>} : vector<128x128xf32>, vector<128x128xf32>, vector<128x128xf32> -> vector<128x128xf32>
    %26 = vector.broadcast %18 : vector<1x128xf32> to vector<128x128xf32>
    %27 = arith.addf %25, %26 : vector<128x128xf32>
    %cst_23 = arith.constant 0.000000e+00 : f32
    %28 = vector.broadcast %cst_23 : f32 to vector<128x128xf32>
    %29 = arith.maximumf %27, %28 : vector<128x128xf32>
    %cst_24 = arith.constant dense<0.000000e+00> : vector<128x128xf32>
    %30 = tpu.matmul %29, %9, %cst_24 {dimension_numbers = #tpu.dot_dimension_numbers<[1], [0], [0], [1], [0, 0, 1, 1], [], []>} : vector<128x128xf32>, vector<128x128xf32>, vector<128x128xf32> -> vector<128x128xf32>
    %31 = vector.broadcast %19 : vector<1x128xf32> to vector<128x128xf32>
    %32 = arith.addf %30, %31 : vector<128x128xf32>
    %c64_i32 = arith.constant 64 : i32
    %33 = tpu.dynamic_rotate %32 by %c64_i32 dim 1 : vector<128x128xf32>, i32 -> vector<128x128xf32>
    %34 = arith.mulf %32, %33 : vector<128x128xf32>
    %cst_25 = arith.constant dense<0.000000e+00> : vector<128x128xf32>
    %35 = tpu.matmul %0, %10, %cst_25 {dimension_numbers = #tpu.dot_dimension_numbers<[1], [0], [0], [1], [0, 0, 1, 1], [], []>} : vector<128x128xf32>, vector<128x128xf32>, vector<128x128xf32> -> vector<128x128xf32>
    %cst_26 = arith.constant dense<0.000000e+00> : vector<128x128xf32>
    %36 = tpu.matmul %34, %11, %cst_26 {dimension_numbers = #tpu.dot_dimension_numbers<[1], [0], [0], [1], [0, 0, 1, 1], [], []>} : vector<128x128xf32>, vector<128x128xf32>, vector<128x128xf32> -> vector<128x128xf32>
    %37 = arith.addf %35, %36 : vector<128x128xf32>
    %c64_i32_27 = arith.constant 64 : i32
    %38 = tpu.dynamic_rotate %37 by %c64_i32_27 dim 1 : vector<128x128xf32>, i32 -> vector<128x128xf32>
    %39 = arith.mulf %37, %38 : vector<128x128xf32>
    %cst_28 = arith.constant dense<0.000000e+00> : vector<128x128xf32>
    %40 = tpu.matmul %39, %12, %cst_28 {dimension_numbers = #tpu.dot_dimension_numbers<[1], [0], [0], [1], [0, 0, 1, 1], [], []>} : vector<128x128xf32>, vector<128x128xf32>, vector<128x128xf32> -> vector<128x128xf32>
    %41 = vector.broadcast %20 : vector<1x128xf32> to vector<128x128xf32>
    %42 = arith.addf %40, %41 : vector<128x128xf32>
    %cst_29 = arith.constant 0.000000e+00 : f32
    %43 = vector.broadcast %cst_29 : f32 to vector<128x128xf32>
    %44 = arith.maximumf %42, %43 : vector<128x128xf32>
    %cst_30 = arith.constant dense<0.000000e+00> : vector<128x128xf32>
    %45 = tpu.matmul %0, %13, %cst_30 {dimension_numbers = #tpu.dot_dimension_numbers<[1], [0], [0], [1], [0, 0, 1, 1], [], []>} : vector<128x128xf32>, vector<128x128xf32>, vector<128x128xf32> -> vector<128x128xf32>
    %cst_31 = arith.constant dense<0.000000e+00> : vector<128x128xf32>
    %46 = tpu.matmul %34, %14, %cst_31 {dimension_numbers = #tpu.dot_dimension_numbers<[1], [0], [0], [1], [0, 0, 1, 1], [], []>} : vector<128x128xf32>, vector<128x128xf32>, vector<128x128xf32> -> vector<128x128xf32>
    %47 = arith.addf %45, %46 : vector<128x128xf32>
    %c64_i32_32 = arith.constant 64 : i32
    %48 = tpu.dynamic_rotate %0 by %c64_i32_32 dim 1 : vector<128x128xf32>, i32 -> vector<128x128xf32>
    %49 = vector.broadcast %22 : vector<1x128xf32> to vector<128x128xf32>
    %50 = arith.mulf %48, %49 : vector<128x128xf32>
    %51 = arith.addf %47, %50 : vector<128x128xf32>
    %52 = vector.broadcast %21 : vector<1x128xf32> to vector<128x128xf32>
    %53 = arith.addf %51, %52 : vector<128x128xf32>
    %cst_33 = arith.constant 0.000000e+00 : f32
    %54 = vector.broadcast %cst_33 : f32 to vector<128x128xf32>
    %55 = arith.maximumf %53, %54 : vector<128x128xf32>
    %c64_i32_34 = arith.constant 64 : i32
    %56 = tpu.dynamic_rotate %55 by %c64_i32_34 dim 1 : vector<128x128xf32>, i32 -> vector<128x128xf32>
    %57 = arith.addf %44, %56 : vector<128x128xf32>
    %cst_35 = arith.constant dense<0.000000e+00> : vector<128x128xf32>
    %58 = tpu.matmul %57, %15, %cst_35 {dimension_numbers = #tpu.dot_dimension_numbers<[1], [0], [0], [1], [0, 0, 1, 1], [], []>} : vector<128x128xf32>, vector<128x128xf32>, vector<128x128xf32> -> vector<128x128xf32>
    %59 = vector.broadcast %23 : vector<1x128xf32> to vector<128x128xf32>
    %60 = arith.addf %58, %59 : vector<128x128xf32>
    %c64_i32_36 = arith.constant 64 : i32
    %61 = tpu.dynamic_rotate %60 by %c64_i32_36 dim 1 : vector<128x128xf32>, i32 -> vector<128x128xf32>
    %cst_37 = arith.constant 0.000000e+00 : f32
    %62 = vector.broadcast %cst_37 : f32 to vector<128x128xf32>
    %63 = arith.subf %62, %61 : vector<128x128xf32>
    %64 = math.exp %63 : vector<128x128xf32>
    %cst_38 = arith.constant 1.000000e+00 : f32
    %65 = vector.broadcast %cst_38 : f32 to vector<128x128xf32>
    %66 = arith.addf %65, %64 : vector<128x128xf32>
    %cst_39 = arith.constant 1.000000e+00 : f32
    %67 = vector.broadcast %cst_39 : f32 to vector<128x128xf32>
    %68 = arith.divf %67, %66 : vector<128x128xf32>
    %69 = arith.mulf %60, %68 : vector<128x128xf32>
    %cst_40 = arith.constant dense<0.000000e+00> : vector<128x128xf32>
    %70 = tpu.matmul %69, %16, %cst_40 {dimension_numbers = #tpu.dot_dimension_numbers<[1], [0], [0], [1], [0, 0, 1, 1], [], []>} : vector<128x128xf32>, vector<128x128xf32>, vector<128x128xf32> -> vector<128x128xf32>
    %cst_41 = arith.constant dense<0.000000e+00> : vector<128x128xf32>
    %71 = tpu.matmul %2, %6, %cst_41 {dimension_numbers = #tpu.dot_dimension_numbers<[1], [0], [0], [1], [0, 0, 1, 1], [], []>} : vector<128x128xf32>, vector<128x128xf32>, vector<128x128xf32> -> vector<128x128xf32>
    %72 = arith.mulf %71, %70 : vector<128x128xf32>
    %cst_42 = arith.constant dense<0.000000e+00> : vector<8x128xf32>
    %73 = tpu.matmul %3, %72, %cst_42 {dimension_numbers = #tpu.dot_dimension_numbers<[1], [0], [0], [1], [0, 0, 1, 1], [], []>} : vector<8x128xf32>, vector<128x128xf32>, vector<8x128xf32> -> vector<8x128xf32>
    %cst_43 = arith.constant dense<0.000000e+00> : vector<8x128xf32>
    %74 = tpu.matmul %4, %72, %cst_43 {dimension_numbers = #tpu.dot_dimension_numbers<[1], [0], [0], [1], [0, 0, 1, 1], [], []>} : vector<8x128xf32>, vector<128x128xf32>, vector<8x128xf32> -> vector<8x128xf32>
    %c64_i32_44 = arith.constant 64 : i32
    %75 = tpu.dynamic_rotate %74 by %c64_i32_44 dim 1 : vector<8x128xf32>, i32 -> vector<8x128xf32>
    %76 = arith.addf %73, %75 : vector<8x128xf32>
    %cst_45 = arith.constant 1.000000e-01 : f32
    %77 = vector.broadcast %cst_45 : f32 to vector<8x128xf32>
    %78 = arith.mulf %76, %77 : vector<8x128xf32>
    %79 = arith.addf %7, %78 : vector<8x128xf32>
    %c0_46 = arith.constant 0 : index
    %c0_47 = arith.constant 0 : index
    %80 = vector.load %arg2[%c0_46, %c0_47] : memref<8x128xf32, #tpu.memory_space<vmem>>, vector<8x128xf32>
    tpu.vector_store %arg2[%c0_46, %c0_47], %79 {strides = array<i32>} : memref<8x128xf32, #tpu.memory_space<vmem>>, vector<8x128xf32>,
    return
  }
}

</mosaic_0001>

<bundles_post_ra>
// kernel: pos_predictor.1
= control target key start
LH: loop header
LB: loop body
LE: loop exit
PB: predicated region body
PF: predicated region fallthrough
CT: control target
= control target key end

     0   :  { %s3579_s15 = smov 64   ;;  %vm3581_vm0 = vmmov 0   ;;  %s4795_s0 = inlined_call_operand.vmem [shape: f32[664,128], index: 0, kind: input, shape index: {}]   ;;  %s4796_s1 = inlined_call_operand.vmem [shape: f32[1160,128], index: 1, kind: input, shape index: {}]   ;;  %s4797_s2 = inlined_call_operand.vmem [shape: f32[8,128], index: 2, kind: output, shape index: {}]  }
   0x1   :  { %v76_v0 = vld [vmem:[%s4795_s0 + $0x208] sm:$0xff]  ;;  %v75_v1 = vld [vmem:[%s4795_s0 + $0x200] sm:$0xff]  ;;  %v74_v2 = vld [vmem:[%s4795_s0 + $0x1f8] sm:$0xff] }
   0x2   :  { %2825 = vmatprep.subr.mxu0 %v76_v0  ;;  %v73_v3 = vld [vmem:[%s4795_s0 + $0x1f0] sm:$0xff]  ;;  %v27_v4 = vld [vmem:[%s4795_s0 + $0x80] sm:$0xff]  ;;  %v72_v5 = vld [vmem:[%s4795_s0 + $0x1e8] sm:$0xff] }
   0x3   :  { %2826 = vmatpush3.msra.mxu0 %v76_v0  ;;  %2857 = vmatprep.mubr.f32.mxu0 %v27_v4  ;;  %v71_v6 = vld [vmem:[%s4795_s0 + $0x1e0] sm:$0xff]  ;;  %v70_v7 = vld [vmem:[%s4795_s0 + $0x1d8] sm:$0xff]  ;;  %v108_v9 = vld [vmem:[%s4796_s1 + $0x70] sm:$0xff] }
   0x4   :  { %2827 = vmatprep.subr.mxu0 %v75_v1  ;;  %v109_v8 = vld [vmem:[%s4796_s1 + $0x78] sm:$0xff]  ;;  %v69_v10 = vld [vmem:[%s4795_s0 + $0x1d0] sm:$0xff]  ;;  %v107_v11 = vld [vmem:[%s4796_s1 + $0x68] sm:$0xff] }
   0x5   :  { %2828 = vmatpush3.msra.mxu0 %v75_v1  ;;  %2881 = vmatprep.subr.mxu1 %v109_v8  ;;  %v68_v12 = vld [vmem:[%s4795_s0 + $0x1c8] sm:$0xff]  ;;  %v106_v13 = vld [vmem:[%s4796_s1 + $0x60] sm:$0xff]  ;;  %v105_v15 = vld [vmem:[%s4796_s1 + $0x58] sm:$0xff] }
   0x6   :  { %2829 = vmatprep.subr.mxu0 %v74_v2  ;;  %2882 = vmatpush3.msra.mxu1 %v109_v8  ;;  %v67_v14 = vld [vmem:[%s4795_s0 + $0x1c0] sm:$0xff]  ;;  %v66_v16 = vld [vmem:[%s4795_s0 + $0x1b8] sm:$0xff]  ;;  %v104_v17 = vld [vmem:[%s4796_s1 + $0x50] sm:$0xff] }
   0x7   :  { %2830 = vmatpush3.msra.mxu0 %v74_v2  ;;  %2883 = vmatprep.subr.mxu1 %v108_v9  ;;  %v65_v18 = vld [vmem:[%s4795_s0 + $0x1b0] sm:$0xff]  ;;  %v103_v19 = vld [vmem:[%s4796_s1 + $0x48] sm:$0xff]  ;;  %v102_v21 = vld [vmem:[%s4796_s1 + $0x40] sm:$0xff] }
   0x8   :  { %2831 = vmatprep.subr.mxu0 %v73_v3  ;;  %2884 = vmatpush3.msra.mxu1 %v108_v9  ;;  %v64_v20 = vld [vmem:[%s4795_s0 + $0x1a8] sm:$0xff]  ;;  %v63_v22 = vld [vmem:[%s4795_s0 + $0x1a0] sm:$0xff]  ;;  %v101_v23 = vld [vmem:[%s4796_s1 + $0x38] sm:$0xff] }
   0x9   :  { %2832 = vmatpush3.msra.mxu0 %v73_v3  ;;  %2885 = vmatprep.subr.mxu1 %v107_v11  ;;  %v62_v24 = vld [vmem:[%s4795_s0 + $0x198] sm:$0xff]  ;;  %v100_v25 = vld [vmem:[%s4796_s1 + $0x30] sm:$0xff]  ;;  %v99_v27 = vld [vmem:[%s4796_s1 + $0x28] sm:$0xff] }
   0xa   :  { %2833 = vmatprep.subr.mxu0 %v72_v5  ;;  %2886 = vmatpush3.msra.mxu1 %v107_v11  ;;  %v61_v26 = vld [vmem:[%s4795_s0 + $0x190] sm:$0xff]  ;;  %v28_v28 = vld [vmem:[%s4795_s0 + $0x88] sm:$0xff]  ;;  %v98_v29 = vld [vmem:[%s4796_s1 + $0x20] sm:$0xff] }
   0xb   :  { %2834 = vmatpush3.msra.mxu0 %v72_v5  ;;  %2887 = vmatprep.subr.mxu1 %v106_v13  ;;  %v29_v30 = vld [vmem:[%s4795_s0 + $0x90] sm:$0xff]  ;;  %v97_v31 = vld [vmem:[%s4796_s1 + $0x18] sm:$0xff]  ;;  %v31_v34 = vld [vmem:[%s4795_s0 + $0xa0] sm:$0xff] }
   0xc   :  { %2835 = vmatprep.subr.mxu0 %v71_v6  ;;  %2888 = vmatpush3.msra.mxu1 %v106_v13  ;;  %v30_v32 = vld [vmem:[%s4795_s0 + $0x98] sm:$0xff]  ;;  %v96_v33 = vld [vmem:[%s4796_s1 + $0x10] sm:$0xff]  ;;  %v32_v35 = vld [vmem:[%s4795_s0 + $0xa8] sm:$0xff] }
   0xd   :  { %2836 = vmatpush3.msra.mxu0 %v71_v6  ;;  %2889 = vmatprep.subr.mxu1 %v105_v15  ;;  %v33_v36 = vld [vmem:[%s4795_s0 + $0xb0] sm:$0xff]  ;;  %v34_v37 = vld [vmem:[%s4795_s0 + $0xb8] sm:$0xff]  ;;  %v35_v38 = vld [vmem:[%s4795_s0 + $0xc0] sm:$0xff] }
   0xe   :  { %2837 = vmatprep.subr.mxu0 %v70_v7  ;;  %2890 = vmatpush3.msra.mxu1 %v105_v15  ;;  %v36_v39 = vld [vmem:[%s4795_s0 + $0xc8] sm:$0xff]  ;;  %v37_v40 = vld [vmem:[%s4795_s0 + $0xd0] sm:$0xff]  ;;  %v38_v41 = vld [vmem:[%s4795_s0 + $0xd8] sm:$0xff] }
   0xf   :  { %2838 = vmatpush3.msra.mxu0 %v70_v7  ;;  %2891 = vmatprep.subr.mxu1 %v104_v17  ;;  %v39_v42 = vld [vmem:[%s4795_s0 + $0xe0] sm:$0xff]  ;;  %v40_v43 = vld [vmem:[%s4795_s0 + $0xe8] sm:$0xff]  ;;  %v41_v44 = vld [vmem:[%s4795_s0 + $0xf0] sm:$0xff] }
  0x10   :  { %2839 = vmatprep.subr.mxu0 %v69_v10  ;;  %2892 = vmatpush3.msra.mxu1 %v104_v17  ;;  %v42_v45 = vld [vmem:[%s4795_s0 + $0xf8] sm:$0xff]  ;;  %v95_v46 = vld [vmem:[%s4796_s1 + $0x8] sm:$0xff]  ;;  %v94_v47 = vld [vmem:[%s4796_s1] sm:$0xff] }
  0x11   :  { %2840 = vmatpush3.msra.mxu0 %v69_v10  ;;  %2893 = vmatprep.subr.mxu1 %v103_v19  ;;  %v125_v48 = vld [vmem:[%s4796_s1 + $0xf8] sm:$0xff]  ;;  %v124_v49 = vld [vmem:[%s4796_s1 + $0xf0] sm:$0xff]  ;;  %v123_v50 = vld [vmem:[%s4796_s1 + $0xe8] sm:$0xff] }
  0x12   :  { %2841 = vmatprep.subr.mxu0 %v68_v12  ;;  %2894 = vmatpush3.msra.mxu1 %v103_v19  ;;  %v122_v51 = vld [vmem:[%s4796_s1 + $0xe0] sm:$0xff]  ;;  %v121_v52 = vld [vmem:[%s4796_s1 + $0xd8] sm:$0xff]  ;;  %v120_v53 = vld [vmem:[%s4796_s1 + $0xd0] sm:$0xff] }
  0x13   :  { %2842 = vmatpush3.msra.mxu0 %v68_v12  ;;  %2895 = vmatprep.subr.mxu1 %v102_v21  ;;  %v119_v54 = vld [vmem:[%s4796_s1 + $0xc8] sm:$0xff]  ;;  %v118_v55 = vld [vmem:[%s4796_s1 + $0xc0] sm:$0xff]  ;;  %v117_v56 = vld [vmem:[%s4796_s1 + $0xb8] sm:$0xff] }
  0x14   :  { %2843 = vmatprep.subr.mxu0 %v67_v14  ;;  %2896 = vmatpush3.msra.mxu1 %v102_v21  ;;  %v116_v57 = vld [vmem:[%s4796_s1 + $0xb0] sm:$0xff]  ;;  %v115_v58 = vld [vmem:[%s4796_s1 + $0xa8] sm:$0xff]  ;;  %v114_v59 = vld [vmem:[%s4796_s1 + $0xa0] sm:$0xff] }
  0x15   :  { %2844 = vmatpush3.msra.mxu0 %v67_v14  ;;  %2897 = vmatprep.subr.mxu1 %v101_v23  ;;  %v113_v12 = vld [vmem:[%s4796_s1 + $0x98] sm:$0xff]  ;;  %v112_v13 = vld [vmem:[%s4796_s1 + $0x90] sm:$0xff]  ;;  %v111_v14 = vld [vmem:[%s4796_s1 + $0x88] sm:$0xff] }
  0x16   :  { %2845 = vmatprep.subr.mxu0 %v66_v16  ;;  %2898 = vmatpush3.msra.mxu1 %v101_v23  ;;  %v110_v15 = vld [vmem:[%s4796_s1 + $0x80] sm:$0xff] }
  0x17   :  { %2846 = vmatpush3.msra.mxu0 %v66_v16  ;;  %2899 = vmatprep.subr.mxu1 %v100_v25  ;;  %v384_v16 = vlaneseq  ;;  %v3795_v19 = vld [vmem:[%s4796_s1 + $0x480] sm:$0xff] }
  0x18   :  { %2847 = vmatprep.subr.mxu0 %v65_v18  ;;  %2900 = vmatpush3.msra.mxu1 %v100_v25 }
  0x19   :  { %2848 = vmatpush3.msra.mxu0 %v65_v18  ;;  %2901 = vmatprep.subr.mxu1 %v99_v27  ;;  %v3789_v17 = vshrl.u32 %v384_v16, 7  ;;  %v154_v16 = vld [vmem:[%s4796_s1 + $0x1e0] sm:$0xff] }
  0x1a   :  { %2849 = vmatprep.subr.mxu0 %v64_v20  ;;  %2902 = vmatpush3.msra.mxu1 %v99_v27 }
  0x1b   :  { %2850 = vmatpush3.msra.mxu0 %v64_v20  ;;  %2903 = vmatprep.subr.mxu1 %v98_v29  ;;  %v386_v18 = vsub.s32 0, %v3789_v17 }
  0x1c   :  { %2851 = vmatprep.subr.mxu0 %v63_v22  ;;  %2904 = vmatpush3.msra.mxu1 %v98_v29 }
  0x1d   :  { %2852 = vmatpush3.msra.mxu0 %v63_v22  ;;  %2905 = vmatprep.subr.mxu1 %v97_v31  ;;  %v387_v20 = vrot.slane %v3795_v19, %v386_v18  ;;  %v134_v18 = vld [vmem:[%s4796_s1 + $0x140] sm:$0xff] }
  0x1e   :  { %2853 = vmatprep.subr.mxu0 %v62_v24  ;;  %2906 = vmatpush3.msra.mxu1 %v97_v31 }
  0x1f   :  { %2854 = vmatpush3.msra.mxu0 %v62_v24  ;;  %2907 = vmatprep.subr.mxu1 %v96_v33 }
  0x20   :  { %2855 = vmatprep.subr.mxu0 %v61_v26  ;;  %2908 = vmatpush3.msra.mxu1 %v96_v33 }
  0x21   :  { %2856 = vmatpush3.msra.mxu0 %v61_v26  ;;  %2909 = vmatprep.subr.mxu1 %v95_v46 }
  0x22   :  { %2858 = vmatmul.mubr.f32.vlgmr.msra.gmra.mxu0 %v28_v28  ;;  %2910 = vmatpush3.msra.mxu1 %v95_v46 }
  0x23   :  { %2860 = vmatprep.mubr.f32.mxu0 %v29_v30  ;;  %2911 = vmatprep.subr.mxu1 %v94_v47 }
  0x24   :  { %2912 = vmatpush3.msra.mxu1 %v94_v47  ;;  %2937 = vmatprep.subr.mxu0 %v125_v48 }
  0x25   :  { %2938 = vmatpush3.msra.mxu0 %v125_v48 }
  0x26   :  { %2861 = vmatmul.mubr.f32.gmra.mxu0 %v30_v32  ;;  %2939 = vmatprep.subr.mxu0 %v124_v49 }
  0x27   :  { %2863 = vmatprep.mubr.f32.mxu0 %v31_v34  ;;  %2940 = vmatpush3.msra.mxu0 %v124_v49 }
  0x28   :  { %2941 = vmatprep.subr.mxu0 %v123_v50 }
  0x29   :  { %2942 = vmatpush3.msra.mxu0 %v123_v50 }
  0x2a   :  { %2864 = vmatmul.mubr.f32.gmra.mxu0 %v32_v35  ;;  %2943 = vmatprep.subr.mxu0 %v122_v51 }
  0x2b   :  { %2866 = vmatprep.mubr.f32.mxu0 %v33_v36  ;;  %2944 = vmatpush3.msra.mxu0 %v122_v51 }
  0x2c   :  { %2945 = vmatprep.subr.mxu0 %v121_v52 }
  0x2d   :  { %2946 = vmatpush3.msra.mxu0 %v121_v52 }
  0x2e   :  { %2867 = vmatmul.mubr.f32.gmra.mxu0 %v34_v37  ;;  %2947 = vmatprep.subr.mxu0 %v120_v53 }
  0x2f   :  { %2869 = vmatprep.mubr.f32.mxu0 %v35_v38  ;;  %2948 = vmatpush3.msra.mxu0 %v120_v53 }
  0x30   :  { %2949 = vmatprep.subr.mxu0 %v119_v54 }
  0x31   :  { %2950 = vmatpush3.msra.mxu0 %v119_v54 }
  0x32   :  { %2870 = vmatmul.mubr.f32.gmra.mxu0 %v36_v39  ;;  %2951 = vmatprep.subr.mxu0 %v118_v55 }
  0x33   :  { %2872 = vmatprep.mubr.f32.mxu0 %v37_v40  ;;  %2952 = vmatpush3.msra.mxu0 %v118_v55 }
  0x34   :  { %2953 = vmatprep.subr.mxu0 %v117_v56 }
  0x35   :  { %2954 = vmatpush3.msra.mxu0 %v117_v56 }
  0x36   :  { %2873 = vmatmul.mubr.f32.gmra.mxu0 %v38_v41  ;;  %2955 = vmatprep.subr.mxu0 %v116_v57 }
  0x37   :  { %2875 = vmatprep.mubr.f32.mxu0 %v39_v42  ;;  %2956 = vmatpush3.msra.mxu0 %v116_v57 }
  0x38   :  { %2957 = vmatprep.subr.mxu0 %v115_v58 }
  0x39   :  { %2958 = vmatpush3.msra.mxu0 %v115_v58 }
  0x3a   :  { %2876 = vmatmul.mubr.f32.gmra.mxu0 %v40_v43  ;;  %2959 = vmatprep.subr.mxu0 %v114_v59 }
  0x3b   :  { %2878 = vmatprep.mubr.f32.mxu0 %v41_v44  ;;  %2960 = vmatpush3.msra.mxu0 %v114_v59 }
  0x3c   :  { %2961 = vmatprep.subr.mxu0 %v113_v12 }
  0x3d   :  { %2962 = vmatpush3.msra.mxu0 %v113_v12  ;;  %v156_v12 = vld [vmem:[%s4796_s1 + $0x1f0] sm:$0xff] }
  0x3e   :  { %2879 = vmatmul.mubr.f32.gmra.mxu0 %v42_v45  ;;  %2963 = vmatprep.subr.mxu0 %v112_v13 }
  0x3f   :  { %2964 = vmatpush3.msra.mxu0 %v112_v13  ;;  %v136_v13 = vld [vmem:[%s4796_s1 + $0x150] sm:$0xff] }
  0x40   :  { %2965 = vmatprep.subr.mxu0 %v111_v14 }
  0x41   :  { %2966 = vmatpush3.msra.mxu0 %v111_v14  ;;  %v155_v14 = vld [vmem:[%s4796_s1 + $0x1e8] sm:$0xff] }
  0x42   :  { %2967 = vmatprep.subr.mxu0 %v110_v15 }
  0x43   :  { %2968 = vmatpush3.msra.mxu0 %v110_v15  ;;  %v135_v15 = vld [vmem:[%s4796_s1 + $0x148] sm:$0xff] }
  0xe2   :  { %v2859_v60 = vpop.f32.mrf.mxu0 }
  0xe4   :  { %v305_v61 = vpop.f32.mrf.mxu0 }
  0xe5   :  { %2913 = vmatprep.mubr.f32.mxu1 %v305_v61 }
  0xe6   :  { %v2862_v62 = vpop.f32.mrf.mxu0  ;;  %2914 = vmatmul.mubr.f32.vlgmr.msra.gmra.mxu1 %v2859_v60 }
  0xe8   :  { %v315_v63 = vpop.f32.mrf.mxu0 }
  0xe9   :  { %2916 = vmatprep.mubr.f32.mxu1 %v315_v63 }
  0xea   :  { %v2865_v0 = vpop.f32.mrf.mxu0  ;;  %2917 = vmatmul.mubr.f32.gmra.mxu1 %v2862_v62 }
  0xec   :  { %v325_v1 = vpop.f32.mrf.mxu0 }
  0xed   :  { %2919 = vmatprep.mubr.f32.mxu1 %v325_v1 }
  0xee   :  { %v2868_v2 = vpop.f32.mrf.mxu0  ;;  %2920 = vmatmul.mubr.f32.gmra.mxu1 %v2865_v0 }
  0xf0   :  { %v335_v3 = vpop.f32.mrf.mxu0 }
  0xf1   :  { %2922 = vmatprep.mubr.f32.mxu1 %v335_v3 }
  0xf2   :  { %v2871_v4 = vpop.f32.mrf.mxu0  ;;  %2923 = vmatmul.mubr.f32.gmra.mxu1 %v2868_v2 }
  0xf4   :  { %v345_v5 = vpop.f32.mrf.mxu0 }
  0xf5   :  { %2925 = vmatprep.mubr.f32.mxu1 %v345_v5  ;;  %v141_v5 = vld [vmem:[%s4796_s1 + $0x178] sm:$0xff] }
  0xf6   :  { %v2874_v6 = vpop.f32.mrf.mxu0  ;;  %2926 = vmatmul.mubr.f32.gmra.mxu1 %v2871_v4  ;;  %3049 = vmatprep.subr.mxu0 %v141_v5 }
  0xf8   :  { %v355_v7 = vpop.f32.mrf.mxu0 }
  0xf9   :  { %2928 = vmatprep.mubr.f32.mxu1 %v355_v7  ;;  %v139_v7 = vld [vmem:[%s4796_s1 + $0x168] sm:$0xff] }
  0xfa   :  { %v2877_v8 = vpop.f32.mrf.mxu0  ;;  %2929 = vmatmul.mubr.f32.gmra.mxu1 %v2874_v6  ;;  %v140_v6 = vld [vmem:[%s4796_s1 + $0x170] sm:$0xff] }
  0xfc   :  { %v365_v9 = vpop.f32.mrf.mxu0 }
  0xfd   :  { %2931 = vmatprep.mubr.f32.mxu1 %v365_v9  ;;  %v3813_v9 = vld [vmem:[%s4795_s0] sm:$0xff] }
  0xfe   :  { %v2880_v10 = vpop.f32.mrf.mxu0  ;;  %2932 = vmatmul.mubr.f32.gmra.mxu1 %v2877_v8  ;;  %v138_v8 = vld [vmem:[%s4796_s1 + $0x160] sm:$0xff] }
 0x100   :  { %v375_v11 = vpop.f32.mrf.mxu0 }
 0x101   :  { %2934 = vmatprep.mubr.f32.mxu1 %v375_v11  ;;  %v157_v11 = vld [vmem:[%s4796_s1 + $0x1f8] sm:$0xff] }
 0x102   :  { %2935 = vmatmul.mubr.f32.gmra.mxu1 %v2880_v10  ;;  %v137_v10 = vld [vmem:[%s4796_s1 + $0x158] sm:$0xff]  ;;  %2993 = vmatprep.subr.mxu1 %v157_v11 }
 0x103   :  { %2994 = vmatpush3.msra.mxu1 %v157_v11 }
 0x104   :  { %2995 = vmatprep.subr.mxu1 %v156_v12 }
 0x105   :  { %2996 = vmatpush3.msra.mxu1 %v156_v12 }
 0x106   :  { %2997 = vmatprep.subr.mxu1 %v155_v14 }
 0x107   :  { %2998 = vmatpush3.msra.mxu1 %v155_v14 }
 0x108   :  { %2999 = vmatprep.subr.mxu1 %v154_v16 }
 0x109   :  { %3000 = vmatpush3.msra.mxu1 %v154_v16 }
 0x1a6   :  { %v2915_v21 = vpop.f32.mrf.mxu1 }
 0x1a7   :  { %v460_v22 = vadd.f32 %v2915_v21, %v387_v20  ;;  %v133_v21 = vld [vmem:[%s4796_s1 + $0x138] sm:$0xff] }
 0x1a8   :  { %v454_v23 = vpop.f32.mrf.mxu1 }
 0x1a9   :  { %v455_v24 = vadd.f32 %v454_v23, %v387_v20  ;;  %v534_v27 = vmax.f32 %v460_v22, 0.0  ;;  %v152_v22 = vld [vmem:[%s4796_s1 + $0x1d0] sm:$0xff] }
 0x1aa   :  { %v2918_v25 = vpop.f32.mrf.mxu1  ;;  %v132_v23 = vld [vmem:[%s4796_s1 + $0x130] sm:$0xff] }
 0x1ab   :  { %v533_v26 = vmax.f32 %v455_v24, 0.0  ;;  %v470_v28 = vadd.f32 %v2918_v25, %v387_v20  ;;  %v151_v24 = vld [vmem:[%s4796_s1 + $0x1c8] sm:$0xff] }
 0x1ac   :  { %v464_v29 = vpop.f32.mrf.mxu1  ;;  %v131_v25 = vld [vmem:[%s4796_s1 + $0x128] sm:$0xff] }
 0x1ad   :  { %v465_v30 = vadd.f32 %v464_v29, %v387_v20  ;;  %2969 = vmatprep.mubr.f32.mxu0 %v533_v26  ;;  %v536_v33 = vmax.f32 %v470_v28, 0.0  ;;  %v150_v26 = vld [vmem:[%s4796_s1 + $0x1c0] sm:$0xff]  ;;  %v149_v28 = vld [vmem:[%s4796_s1 + $0x1b8] sm:$0xff] }
 0x1ae   :  { %v2921_v31 = vpop.f32.mrf.mxu1  ;;  %2970 = vmatmul.mubr.f32.vlgmr.msra.gmra.mxu0 %v534_v27  ;;  %v130_v27 = vld [vmem:[%s4796_s1 + $0x120] sm:$0xff]  ;;  %v129_v29 = vld [vmem:[%s4796_s1 + $0x118] sm:$0xff] }
 0x1af   :  { %v535_v32 = vmax.f32 %v465_v30, 0.0  ;;  %v480_v34 = vadd.f32 %v2921_v31, %v387_v20  ;;  %3050 = vmatpush3.msra.mxu0 %v141_v5  ;;  %v148_v30 = vld [vmem:[%s4796_s1 + $0x1b0] sm:$0xff]  ;;  %v142_v5 = vld [vmem:[%s4796_s1 + $0x180] sm:$0xff] }
 0x1b0   :  { %v474_v35 = vpop.f32.mrf.mxu1  ;;  %3051 = vmatprep.subr.mxu0 %v140_v6  ;;  %v128_v31 = vld [vmem:[%s4796_s1 + $0x110] sm:$0xff] }
 0x1b1   :  { %v475_v36 = vadd.f32 %v474_v35, %v387_v20  ;;  %2972 = vmatprep.mubr.f32.mxu0 %v535_v32  ;;  %v538_v39 = vmax.f32 %v480_v34, 0.0  ;;  %3052 = vmatpush3.msra.mxu0 %v140_v6  ;;  %v147_v32 = vld [vmem:[%s4796_s1 + $0x1a8] sm:$0xff]  ;;  %v146_v34 = vld [vmem:[%s4796_s1 + $0x1a0] sm:$0xff] }
 0x1b2   :  { %v2924_v37 = vpop.f32.mrf.mxu1  ;;  %2973 = vmatmul.mubr.f32.gmra.mxu0 %v536_v33  ;;  %3053 = vmatprep.subr.mxu0 %v139_v7  ;;  %v127_v33 = vld [vmem:[%s4796_s1 + $0x108] sm:$0xff]  ;;  %v126_v35 = vld [vmem:[%s4796_s1 + $0x100] sm:$0xff] }
 0x1b3   :  { %v537_v38 = vmax.f32 %v475_v36, 0.0  ;;  %v490_v40 = vadd.f32 %v2924_v37, %v387_v20  ;;  %3054 = vmatpush3.msra.mxu0 %v139_v7  ;;  %v145_v36 = vld [vmem:[%s4796_s1 + $0x198] sm:$0xff]  ;;  %v3894_v37 = vld [vmem:[%s4795_s0 + $0x8] sm:$0xff]  ;;  %v190_v6 = vld [vmem:[%s4796_s1 + $0x300] sm:$0xff]  ;;  %v551_v7 = vsub.s32 1, %v3789_v17 }
 0x1b4   :  { %v484_v41 = vpop.f32.mrf.mxu1  ;;  %3055 = vmatprep.subr.mxu0 %v138_v8 }
 0x1b5   :  { %v485_v42 = vadd.f32 %v484_v41, %v387_v20  ;;  %2975 = vmatprep.mubr.f32.mxu0 %v537_v38  ;;  %v540_v45 = vmax.f32 %v490_v40, 0.0  ;;  %3056 = vmatpush3.msra.mxu0 %v138_v8  ;;  %v205_v38 = vld [vmem:[%s4796_s1 + $0x378] sm:$0xff]  ;;  %v204_v40 = vld [vmem:[%s4796_s1 + $0x370] sm:$0xff] }
 0x1b6   :  { %v2927_v43 = vpop.f32.mrf.mxu1  ;;  %2976 = vmatmul.mubr.f32.gmra.mxu0 %v538_v39  ;;  %3057 = vmatprep.subr.mxu0 %v137_v10  ;;  %v3902_v39 = vld [vmem:[%s4795_s0 + $0x10] sm:$0xff]  ;;  %v3912_v41 = vld [vmem:[%s4795_s0 + $0x18] sm:$0xff] }
 0x1b7   :  { %v539_v44 = vmax.f32 %v485_v42, 0.0  ;;  %v500_v46 = vadd.f32 %v2927_v43, %v387_v20  ;;  %3058 = vmatpush3.msra.mxu0 %v137_v10  ;;  %v203_v42 = vld [vmem:[%s4796_s1 + $0x368] sm:$0xff]  ;;  %v3920_v43 = vld [vmem:[%s4795_s0 + $0x20] sm:$0xff]  ;;  %v552_v10 = vrot.slane %v3795_v19, %v551_v7 }
 0x1b8   :  { %v494_v47 = vpop.f32.mrf.mxu1  ;;  %3059 = vmatprep.subr.mxu0 %v136_v13 }
 0x1b9   :  { %v495_v48 = vadd.f32 %v494_v47, %v387_v20  ;;  %2978 = vmatprep.mubr.f32.mxu0 %v539_v44  ;;  %v542_v51 = vmax.f32 %v500_v46, 0.0  ;;  %3060 = vmatpush3.msra.mxu0 %v136_v13  ;;  %v202_v44 = vld [vmem:[%s4796_s1 + $0x360] sm:$0xff]  ;;  %v201_v46 = vld [vmem:[%s4796_s1 + $0x358] sm:$0xff]  ;;  %v3938_v47 = vld [vmem:[%s4795_s0 + $0x30] sm:$0xff] }
 0x1ba   :  { %v2930_v49 = vpop.f32.mrf.mxu1  ;;  %2979 = vmatmul.mubr.f32.gmra.mxu0 %v540_v45  ;;  %3061 = vmatprep.subr.mxu0 %v135_v15  ;;  %v3930_v45 = vld [vmem:[%s4795_s0 + $0x28] sm:$0xff] }
 0x1bb   :  { %v541_v50 = vmax.f32 %v495_v48, 0.0  ;;  %v510_v52 = vadd.f32 %v2930_v49, %v387_v20  ;;  %3062 = vmatpush3.msra.mxu0 %v135_v15  ;;  %v200_v48 = vld [vmem:[%s4796_s1 + $0x350] sm:$0xff]  ;;  %v3948_v49 = vld [vmem:[%s4795_s0 + $0x38] sm:$0xff] }
 0x1bc   :  { %v504_v53 = vpop.f32.mrf.mxu1  ;;  %3063 = vmatprep.subr.mxu0 %v134_v18 }
 0x1bd   :  { %v505_v54 = vadd.f32 %v504_v53, %v387_v20  ;;  %2981 = vmatprep.mubr.f32.mxu0 %v541_v50  ;;  %v544_v57 = vmax.f32 %v510_v52, 0.0  ;;  %3064 = vmatpush3.msra.mxu0 %v134_v18  ;;  %v199_v50 = vld [vmem:[%s4796_s1 + $0x348] sm:$0xff]  ;;  %v198_v52 = vld [vmem:[%s4796_s1 + $0x340] sm:$0xff] }
 0x1be   :  { %v2933_v55 = vpop.f32.mrf.mxu1  ;;  %2982 = vmatmul.mubr.f32.gmra.mxu0 %v542_v51  ;;  %3065 = vmatprep.subr.mxu0 %v133_v21  ;;  %v3956_v51 = vld [vmem:[%s4795_s0 + $0x40] sm:$0xff]  ;;  %v3966_v53 = vld [vmem:[%s4795_s0 + $0x48] sm:$0xff] }
 0x1bf   :  { %v543_v56 = vmax.f32 %v505_v54, 0.0  ;;  %v520_v58 = vadd.f32 %v2933_v55, %v387_v20  ;;  %3066 = vmatpush3.msra.mxu0 %v133_v21  ;;  %v197_v54 = vld [vmem:[%s4796_s1 + $0x338] sm:$0xff]  ;;  %v3974_v55 = vld [vmem:[%s4795_s0 + $0x50] sm:$0xff] }
 0x1c0   :  { %v514_v59 = vpop.f32.mrf.mxu1  ;;  %3067 = vmatprep.subr.mxu0 %v132_v23 }
 0x1c1   :  { %v515_v60 = vadd.f32 %v514_v59, %v387_v20  ;;  %2984 = vmatprep.mubr.f32.mxu0 %v543_v56  ;;  %v546_v63 = vmax.f32 %v520_v58, 0.0  ;;  %3068 = vmatpush3.msra.mxu0 %v132_v23  ;;  %v196_v56 = vld [vmem:[%s4796_s1 + $0x330] sm:$0xff]  ;;  %v195_v58 = vld [vmem:[%s4796_s1 + $0x328] sm:$0xff]  ;;  %v3992_v59 = vld [vmem:[%s4795_s0 + $0x60] sm:$0xff] }
 0x1c2   :  { %v2936_v61 = vpop.f32.mrf.mxu1  ;;  %2985 = vmatmul.mubr.f32.gmra.mxu0 %v544_v57  ;;  %3069 = vmatprep.subr.mxu0 %v131_v25  ;;  %v3984_v57 = vld [vmem:[%s4795_s0 + $0x58] sm:$0xff] }
 0x1c3   :  { %v545_v62 = vmax.f32 %v515_v60, 0.0  ;;  %v530_v0 = vadd.f32 %v2936_v61, %v387_v20  ;;  %3070 = vmatpush3.msra.mxu0 %v131_v25  ;;  %v194_v60 = vld [vmem:[%s4796_s1 + $0x320] sm:$0xff]  ;;  %v4002_v61 = vld [vmem:[%s4795_s0 + $0x68] sm:$0xff] }
 0x1c4   :  { %v524_v1 = vpop.f32.mrf.mxu1  ;;  %3071 = vmatprep.subr.mxu0 %v130_v27 }
 0x1c5   :  { %v525_v2 = vadd.f32 %v524_v1, %v387_v20  ;;  %2987 = vmatprep.mubr.f32.mxu0 %v545_v62  ;;  %v548_v4 = vmax.f32 %v530_v0, 0.0  ;;  %v153_v20 = vld [vmem:[%s4796_s1 + $0x1d8] sm:$0xff]  ;;  %3072 = vmatpush3.msra.mxu0 %v130_v27  ;;  %v4014_v0 = vld [vmem:[%s4795_s0 + $0x70] sm:$0xff] }
 0x1c6   :  { %2988 = vmatmul.mubr.f32.gmra.mxu0 %v546_v63  ;;  %3001 = vmatprep.subr.mxu1 %v153_v20  ;;  %v193_v62 = vld [vmem:[%s4796_s1 + $0x318] sm:$0xff]  ;;  %v144_v63 = vld [vmem:[%s4796_s1 + $0x190] sm:$0xff] }
 0x1c7   :  { %v547_v3 = vmax.f32 %v525_v2, 0.0  ;;  %3002 = vmatpush3.msra.mxu1 %v153_v20  ;;  %3073 = vmatprep.subr.mxu0 %v129_v29  ;;  %v192_v1 = vld [vmem:[%s4796_s1 + $0x310] sm:$0xff]  ;;  %v4023_v2 = vld [vmem:[%s4795_s0 + $0x78] sm:$0xff] }
 0x1c8   :  { %3003 = vmatprep.subr.mxu1 %v152_v22  ;;  %3074 = vmatpush3.msra.mxu0 %v129_v29 }
 0x1c9   :  { %2990 = vmatprep.mubr.f32.mxu0 %v547_v3  ;;  %3004 = vmatpush3.msra.mxu1 %v152_v22  ;;  %v143_v3 = vld [vmem:[%s4796_s1 + $0x188] sm:$0xff] }
 0x1ca   :  { %2991 = vmatmul.mubr.f32.gmra.mxu0 %v548_v4  ;;  %3005 = vmatprep.subr.mxu1 %v151_v24  ;;  %v191_v4 = vld [vmem:[%s4796_s1 + $0x308] sm:$0xff] }
 0x1cb   :  { %3081 = vmatprep.mubr.f32.mxu0 %v3813_v9  ;;  %3006 = vmatpush3.msra.mxu1 %v151_v24 }
 0x1cc   :  { %3007 = vmatprep.subr.mxu1 %v150_v26  ;;  %3075 = vmatprep.subr.mxu0 %v128_v31 }
 0x1cd   :  { %3008 = vmatpush3.msra.mxu1 %v150_v26  ;;  %3076 = vmatpush3.msra.mxu0 %v128_v31 }
 0x1ce   :  { %3009 = vmatprep.subr.mxu1 %v149_v28  ;;  %3077 = vmatprep.subr.mxu0 %v127_v33 }
 0x1cf   :  { %3010 = vmatpush3.msra.mxu1 %v149_v28  ;;  %3078 = vmatpush3.msra.mxu0 %v127_v33 }
 0x1d0   :  { %3011 = vmatprep.subr.mxu1 %v148_v30  ;;  %3079 = vmatprep.subr.mxu0 %v126_v35 }
 0x1d1   :  { %3012 = vmatpush3.msra.mxu1 %v148_v30  ;;  %3080 = vmatpush3.msra.mxu0 %v126_v35 }
 0x1d2   :  { %3013 = vmatprep.subr.mxu1 %v147_v32  ;;  %3082 = vmatmul.mubr.f32.vlgmr.msra.gmra.mxu0 %v3894_v37 }
 0x1d3   :  { %3014 = vmatpush3.msra.mxu1 %v147_v32  ;;  %3161 = vmatprep.subr.mxu0 %v205_v38 }
 0x1d4   :  { %3015 = vmatprep.subr.mxu1 %v146_v34  ;;  %3162 = vmatpush3.msra.mxu0 %v205_v38 }
 0x1d5   :  { %3016 = vmatpush3.msra.mxu1 %v146_v34  ;;  %3084 = vmatprep.mubr.f32.mxu0 %v3902_v39 }
 0x1d6   :  { %3017 = vmatprep.subr.mxu1 %v145_v36  ;;  %3163 = vmatprep.subr.mxu0 %v204_v40 }
 0x1d7   :  { %3018 = vmatpush3.msra.mxu1 %v145_v36  ;;  %3164 = vmatpush3.msra.mxu0 %v204_v40 }
 0x1d8   :  { %3085 = vmatmul.mubr.f32.gmra.mxu0 %v3912_v41  ;;  %3165 = vmatprep.subr.mxu0 %v203_v42 }
 0x1d9   :  { %3166 = vmatpush3.msra.mxu0 %v203_v42  ;;  %3087 = vmatprep.mubr.f32.mxu0 %v3920_v43 }
 0x1da   :  { %3167 = vmatprep.subr.mxu0 %v202_v44  ;;  %3019 = vmatprep.subr.mxu1 %v144_v63 }
 0x1db   :  { %3168 = vmatpush3.msra.mxu0 %v202_v44  ;;  %3020 = vmatpush3.msra.mxu1 %v144_v63 }
 0x1dc   :  { %3088 = vmatmul.mubr.f32.gmra.mxu0 %v3930_v45  ;;  %3169 = vmatprep.subr.mxu0 %v201_v46 }
 0x1dd   :  { %3170 = vmatpush3.msra.mxu0 %v201_v46  ;;  %3090 = vmatprep.mubr.f32.mxu0 %v3938_v47 }
 0x1de   :  { %3171 = vmatprep.subr.mxu0 %v200_v48  ;;  %3021 = vmatprep.subr.mxu1 %v143_v3 }
 0x1df   :  { %3172 = vmatpush3.msra.mxu0 %v200_v48  ;;  %3022 = vmatpush3.msra.mxu1 %v143_v3 }
 0x1e0   :  { %3091 = vmatmul.mubr.f32.gmra.mxu0 %v3948_v49  ;;  %3173 = vmatprep.subr.mxu0 %v199_v50 }
 0x1e1   :  { %3174 = vmatpush3.msra.mxu0 %v199_v50  ;;  %3093 = vmatprep.mubr.f32.mxu0 %v3956_v51 }
 0x1e2   :  { %3175 = vmatprep.subr.mxu0 %v198_v52  ;;  %3023 = vmatprep.subr.mxu1 %v142_v5 }
 0x1e3   :  { %3176 = vmatpush3.msra.mxu0 %v198_v52  ;;  %3024 = vmatpush3.msra.mxu1 %v142_v5 }
 0x1e4   :  { %3094 = vmatmul.mubr.f32.gmra.mxu0 %v3966_v53  ;;  %3177 = vmatprep.subr.mxu0 %v197_v54 }
 0x1e5   :  { %3178 = vmatpush3.msra.mxu0 %v197_v54  ;;  %3096 = vmatprep.mubr.f32.mxu0 %v3974_v55 }
 0x1e6   :  { %3179 = vmatprep.subr.mxu0 %v196_v56 }
 0x1e7   :  { %3180 = vmatpush3.msra.mxu0 %v196_v56 }
 0x1e8   :  { %3097 = vmatmul.mubr.f32.gmra.mxu0 %v3984_v57  ;;  %3181 = vmatprep.subr.mxu0 %v195_v58 }
 0x1e9   :  { %3182 = vmatpush3.msra.mxu0 %v195_v58  ;;  %3099 = vmatprep.mubr.f32.mxu0 %v3992_v59 }
 0x1ea   :  { %3183 = vmatprep.subr.mxu0 %v194_v60 }
 0x1eb   :  { %3184 = vmatpush3.msra.mxu0 %v194_v60 }
 0x1ec   :  { %3100 = vmatmul.mubr.f32.gmra.mxu0 %v4002_v61  ;;  %3185 = vmatprep.subr.mxu0 %v193_v62 }
 0x1ed   :  { %3186 = vmatpush3.msra.mxu0 %v193_v62  ;;  %3102 = vmatprep.mubr.f32.mxu0 %v4014_v0 }
 0x1ee   :  { %3187 = vmatprep.subr.mxu0 %v192_v1 }
 0x1ef   :  { %3188 = vmatpush3.msra.mxu0 %v192_v1 }
 0x1f0   :  { %3103 = vmatmul.mubr.f32.gmra.mxu0 %v4023_v2  ;;  %3189 = vmatprep.subr.mxu0 %v191_v4 }
 0x1f1   :  { %3190 = vmatpush3.msra.mxu0 %v191_v4 }
 0x1f2   :  { %3191 = vmatprep.subr.mxu0 %v190_v6 }
 0x1f3   :  { %3192 = vmatpush3.msra.mxu0 %v190_v6 }
 0x26e   :  { %v2971_v8 = vpop.f32.mrf.mxu0 }
 0x26f   :  { %v625_v15 = vadd.f32 %v2971_v8, %v552_v10 }
 0x270   :  { %v619_v11 = vpop.f32.mrf.mxu0 }
 0x271   :  { %v620_v12 = vadd.f32 %v619_v11, %v552_v10 }
 0x272   :  { %v2974_v13 = vpop.f32.mrf.mxu0 }
 0x273   :  { %698 = vrot.lane.b32.xlu0 %v620_v12, %s3579_s15  ;;  %v635_v21 = vadd.f32 %v2974_v13, %v552_v10 }
 0x274   :  { %v629_v14 = vpop.f32.mrf.mxu0 }
 0x275   :  { %v630_v16 = vadd.f32 %v629_v14, %v552_v10 }
 0x276   :  { %v2977_v18 = vpop.f32.mrf.mxu0 }
 0x277   :  { %702 = vrot.lane.b32.xlu1 %v630_v16, %s3579_s15  ;;  %700 = vrot.lane.b32.xlu0 %v625_v15, %s3579_s15  ;;  %v645_v24 = vadd.f32 %v2977_v18, %v552_v10 }
 0x278   :  { %v639_v20 = vpop.f32.mrf.mxu0 }
 0x279   :  { %v640_v22 = vadd.f32 %v639_v20, %v552_v10 }
 0x27a   :  { %v2980_v23 = vpop.f32.mrf.mxu0 }
 0x27b   :  { %704 = vrot.lane.b32.xlu1 %v635_v21, %s3579_s15  ;;  %706 = vrot.lane.b32.xlu0 %v640_v22, %s3579_s15  ;;  %v655_v28 = vadd.f32 %v2980_v23, %v552_v10 }
 0x27c   :  { %v649_v19 = vpop.f32.mrf.mxu0 }
 0x27d   :  { %v650_v25 = vadd.f32 %v649_v19, %v552_v10 }
 0x27e   :  { %v2983_v26 = vpop.f32.mrf.mxu0 }
 0x27f   :  { %708 = vrot.lane.b32.xlu1 %v645_v24, %s3579_s15  ;;  %710 = vrot.lane.b32.xlu0 %v650_v25, %s3579_s15  ;;  %v665_v32 = vadd.f32 %v2983_v26, %v552_v10 }
 0x280   :  { %v659_v27 = vpop.f32.mrf.mxu0 }
 0x281   :  { %v660_v29 = vadd.f32 %v659_v27, %v552_v10 }
 0x282   :  { %v2986_v30 = vpop.f32.mrf.mxu0 }
 0x283   :  { %712 = vrot.lane.b32.xlu1 %v655_v28, %s3579_s15  ;;  %714 = vrot.lane.b32.xlu0 %v660_v29, %s3579_s15  ;;  %v675_v36 = vadd.f32 %v2986_v30, %v552_v10  ;;  %v171_v30 = vld [vmem:[%s4796_s1 + $0x268] sm:$0xff] }
 0x284   :  { %v669_v31 = vpop.f32.mrf.mxu0 }
 0x285   :  { %v670_v33 = vadd.f32 %v669_v31, %v552_v10  ;;  %v170_v31 = vld [vmem:[%s4796_s1 + $0x260] sm:$0xff] }
 0x286   :  { %v2989_v34 = vpop.f32.mrf.mxu0 }
 0x287   :  { %716 = vrot.lane.b32.xlu1 %v665_v32, %s3579_s15  ;;  %718 = vrot.lane.b32.xlu0 %v670_v33, %s3579_s15  ;;  %v685_v44 = vadd.f32 %v2989_v34, %v552_v10  ;;  %v167_v34 = vld [vmem:[%s4796_s1 + $0x248] sm:$0xff] }
 0x288   :  { %v679_v35 = vpop.f32.mrf.mxu0 }
 0x289   :  { %v680_v38 = vadd.f32 %v679_v35, %v552_v10  ;;  %v166_v35 = vld [vmem:[%s4796_s1 + $0x240] sm:$0xff] }
 0x28a   :  { %v2992_v40 = vpop.f32.mrf.mxu0 }
 0x28b   :  { %720 = vrot.lane.b32.xlu1 %v675_v36, %s3579_s15  ;;  %722 = vrot.lane.b32.xlu0 %v680_v38, %s3579_s15  ;;  %v4055_v48 = vadd.f32 %v2992_v40, %v552_v10  ;;  %v163_v40 = vld [vmem:[%s4796_s1 + $0x228] sm:$0xff] }
 0x28c   :  { %v689_v42 = vpop.f32.mrf.mxu0 }
 0x28d   :  { %v690_v46 = vadd.f32 %v689_v42, %v552_v10  ;;  %v162_v42 = vld [vmem:[%s4796_s1 + $0x220] sm:$0xff] }
 0x28f   :  { %724 = vrot.lane.b32.xlu1 %v685_v44, %s3579_s15  ;;  %726 = vrot.lane.b32.xlu0 %v690_v46, %s3579_s15 }
 0x293   :  { %728 = vrot.lane.b32.xlu1 %v4055_v48, %s3579_s15 }
 0x2e5   :  { %v699_v50 = vpop.permute.xlu0 %698 }
 0x2e6   :  { %v730_v52 = vmul.f32 %v699_v50, %v620_v12 }
 0x2e8   :  { %3025 = vmatprep.mubr.f32.mxu1 %v730_v52  ;;  %3193 = vmatprep.mubr.f32.mxu0 %v730_v52 }
 0x2e9   :  { %v703_v54 = vpop.permute.xlu1 %702  ;;  %v701_v56 = vpop.permute.xlu0 %700 }
 0x2ea   :  { %v732_v58 = vmul.f32 %v703_v54, %v630_v16  ;;  %v731_v60 = vmul.f32 %v701_v56, %v625_v15 }
 0x2ec   :  { %3026 = vmatmul.mubr.f32.vlgmr.msra.gmra.mxu1 %v731_v60  ;;  %3194 = vmatmul.mubr.f32.vlgmr.msra.gmra.mxu0 %v731_v60  ;;  %v159_v60 = vld [vmem:[%s4796_s1 + $0x208] sm:$0xff] }
 0x2ed   :  { %v705_v62 = vpop.permute.xlu1 %704  ;;  %v707_v63 = vpop.permute.xlu0 %706  ;;  %3028 = vmatprep.mubr.f32.mxu1 %v732_v58  ;;  %3196 = vmatprep.mubr.f32.mxu0 %v732_v58 }
 0x2ee   :  { %v733_v1 = vmul.f32 %v705_v62, %v635_v21  ;;  %v734_v3 = vmul.f32 %v707_v63, %v640_v22  ;;  %v158_v62 = vld [vmem:[%s4796_s1 + $0x200] sm:$0xff] }
 0x2f0   :  { %3029 = vmatmul.mubr.f32.gmra.mxu1 %v733_v1  ;;  %3197 = vmatmul.mubr.f32.gmra.mxu0 %v733_v1  ;;  %v4111_v1 = vld [vmem:[%s4796_s1 + $0x2f8] sm:$0xff] }
 0x2f1   :  { %v709_v4 = vpop.permute.xlu1 %708  ;;  %v711_v5 = vpop.permute.xlu0 %710  ;;  %3031 = vmatprep.mubr.f32.mxu1 %v734_v3  ;;  %3199 = vmatprep.mubr.f32.mxu0 %v734_v3 }
 0x2f2   :  { %v735_v6 = vmul.f32 %v709_v4, %v645_v24  ;;  %v736_v7 = vmul.f32 %v711_v5, %v650_v25 }
 0x2f4   :  { %3032 = vmatmul.mubr.f32.gmra.mxu1 %v735_v6  ;;  %3200 = vmatmul.mubr.f32.gmra.mxu0 %v735_v6 }
 0x2f5   :  { %v713_v8 = vpop.permute.xlu1 %712  ;;  %v715_v10 = vpop.permute.xlu0 %714  ;;  %3034 = vmatprep.mubr.f32.mxu1 %v736_v7  ;;  %3202 = vmatprep.mubr.f32.mxu0 %v736_v7 }
 0x2f6   :  { %v737_v11 = vmul.f32 %v713_v8, %v655_v28  ;;  %v738_v12 = vmul.f32 %v715_v10, %v660_v29  ;;  %v173_v28 = vld [vmem:[%s4796_s1 + $0x278] sm:$0xff]  ;;  %v172_v29 = vld [vmem:[%s4796_s1 + $0x270] sm:$0xff] }
 0x2f7   :  { %3105 = vmatprep.subr.mxu1 %v173_v28 }
 0x2f8   :  { %3035 = vmatmul.mubr.f32.gmra.mxu1 %v737_v11  ;;  %3203 = vmatmul.mubr.f32.gmra.mxu0 %v737_v11 }
 0x2f9   :  { %v717_v13 = vpop.permute.xlu1 %716  ;;  %v719_v14 = vpop.permute.xlu0 %718  ;;  %3037 = vmatprep.mubr.f32.mxu1 %v738_v12  ;;  %3205 = vmatprep.mubr.f32.mxu0 %v738_v12 }
 0x2fa   :  { %v739_v15 = vmul.f32 %v717_v13, %v665_v32  ;;  %v740_v16 = vmul.f32 %v719_v14, %v670_v33  ;;  %3106 = vmatpush3.msra.mxu1 %v173_v28  ;;  %v169_v32 = vld [vmem:[%s4796_s1 + $0x258] sm:$0xff]  ;;  %v168_v33 = vld [vmem:[%s4796_s1 + $0x250] sm:$0xff] }
 0x2fb   :  { %3107 = vmatprep.subr.mxu1 %v172_v29 }
 0x2fc   :  { %3038 = vmatmul.mubr.f32.gmra.mxu1 %v739_v15  ;;  %3206 = vmatmul.mubr.f32.gmra.mxu0 %v739_v15 }
 0x2fd   :  { %v721_v18 = vpop.permute.xlu1 %720  ;;  %v723_v20 = vpop.permute.xlu0 %722  ;;  %3040 = vmatprep.mubr.f32.mxu1 %v740_v16  ;;  %3208 = vmatprep.mubr.f32.mxu0 %v740_v16 }
 0x2fe   :  { %v741_v21 = vmul.f32 %v721_v18, %v675_v36  ;;  %v742_v22 = vmul.f32 %v723_v20, %v680_v38  ;;  %3108 = vmatpush3.msra.mxu1 %v172_v29  ;;  %v165_v36 = vld [vmem:[%s4796_s1 + $0x238] sm:$0xff]  ;;  %v164_v38 = vld [vmem:[%s4796_s1 + $0x230] sm:$0xff] }
 0x2ff   :  { %3109 = vmatprep.subr.mxu1 %v171_v30 }
 0x300   :  { %3041 = vmatmul.mubr.f32.gmra.mxu1 %v741_v21  ;;  %3209 = vmatmul.mubr.f32.gmra.mxu0 %v741_v21 }
 0x301   :  { %v725_v23 = vpop.permute.xlu1 %724  ;;  %3043 = vmatprep.mubr.f32.mxu1 %v742_v22  ;;  %v727_v19 = vpop.permute.xlu0 %726  ;;  %3211 = vmatprep.mubr.f32.mxu0 %v742_v22 }
 0x302   :  { %v743_v24 = vmul.f32 %v725_v23, %v685_v44  ;;  %v744_v25 = vmul.f32 %v727_v19, %v690_v46  ;;  %3110 = vmatpush3.msra.mxu1 %v171_v30  ;;  %v161_v44 = vld [vmem:[%s4796_s1 + $0x218] sm:$0xff]  ;;  %v160_v46 = vld [vmem:[%s4796_s1 + $0x210] sm:$0xff] }
 0x303   :  { %3111 = vmatprep.subr.mxu1 %v170_v31 }
 0x304   :  { %3044 = vmatmul.mubr.f32.gmra.mxu1 %v743_v24  ;;  %3212 = vmatmul.mubr.f32.gmra.mxu0 %v743_v24 }
 0x305   :  { %v729_v26 = vpop.permute.xlu1 %728  ;;  %3046 = vmatprep.mubr.f32.mxu1 %v744_v25  ;;  %3214 = vmatprep.mubr.f32.mxu0 %v744_v25 }
 0x306   :  { %v745_v27 = vmul.f32 %v729_v26, %v4055_v48  ;;  %3112 = vmatpush3.msra.mxu1 %v170_v31  ;;  %v3083_v48 = vpop.f32.mrf.mxu0 }
 0x307   :  { %3113 = vmatprep.subr.mxu1 %v169_v32 }
 0x308   :  { %3047 = vmatmul.mubr.f32.gmra.mxu1 %v745_v27  ;;  %3215 = vmatmul.mubr.f32.gmra.mxu0 %v745_v27  ;;  %v957_v50 = vpop.f32.mrf.mxu0 }
 0x309   :  { %3114 = vmatpush3.msra.mxu1 %v169_v32 }
 0x30a   :  { %3115 = vmatprep.subr.mxu1 %v168_v33  ;;  %v3086_v52 = vpop.f32.mrf.mxu0 }
 0x30b   :  { %3116 = vmatpush3.msra.mxu1 %v168_v33 }
 0x30c   :  { %3117 = vmatprep.subr.mxu1 %v167_v34  ;;  %v967_v54 = vpop.f32.mrf.mxu0 }
 0x30d   :  { %3118 = vmatpush3.msra.mxu1 %v167_v34 }
 0x30e   :  { %3119 = vmatprep.subr.mxu1 %v166_v35  ;;  %v3089_v56 = vpop.f32.mrf.mxu0 }
 0x30f   :  { %3120 = vmatpush3.msra.mxu1 %v166_v35 }
 0x310   :  { %3121 = vmatprep.subr.mxu1 %v165_v36  ;;  %v977_v58 = vpop.f32.mrf.mxu0 }
 0x311   :  { %3122 = vmatpush3.msra.mxu1 %v165_v36 }
 0x312   :  { %3123 = vmatprep.subr.mxu1 %v164_v38  ;;  %v3092_v63 = vpop.f32.mrf.mxu0 }
 0x313   :  { %3124 = vmatpush3.msra.mxu1 %v164_v38 }
 0x314   :  { %3125 = vmatprep.subr.mxu1 %v163_v40  ;;  %v987_v3 = vpop.f32.mrf.mxu0 }
 0x315   :  { %3126 = vmatpush3.msra.mxu1 %v163_v40 }
 0x316   :  { %3127 = vmatprep.subr.mxu1 %v162_v42  ;;  %v3095_v6 = vpop.f32.mrf.mxu0 }
 0x317   :  { %3128 = vmatpush3.msra.mxu1 %v162_v42 }
 0x318   :  { %3129 = vmatprep.subr.mxu1 %v161_v44  ;;  %v997_v12 = vpop.f32.mrf.mxu0 }
 0x319   :  { %3130 = vmatpush3.msra.mxu1 %v161_v44 }
 0x31a   :  { %3131 = vmatprep.subr.mxu1 %v160_v46  ;;  %v3098_v18 = vpop.f32.mrf.mxu0 }
 0x31b   :  { %3132 = vmatpush3.msra.mxu1 %v160_v46 }
 0x31c   :  { %3133 = vmatprep.subr.mxu1 %v159_v60  ;;  %v1007_v19 = vpop.f32.mrf.mxu0 }
 0x31d   :  { %3134 = vmatpush3.msra.mxu1 %v159_v60 }
 0x31e   :  { %3135 = vmatprep.subr.mxu1 %v158_v62  ;;  %v3101_v28 = vpop.f32.mrf.mxu0 }
 0x31f   :  { %3136 = vmatpush3.msra.mxu1 %v158_v62 }
 0x320   :  { %3217 = vmatprep.subr.mxu1 %v4111_v1  ;;  %v1017_v33 = vpop.f32.mrf.mxu0 }
 0x322   :  { %v3104_v40 = vpop.f32.mrf.mxu0 }
 0x3ac   :  { %v3027_v4 = vpop.f32.mrf.mxu1 }
 0x3ad   :  { %v4114_v5 = vadd.f32 %v3083_v48, %v3027_v4 }
 0x3ae   :  { %v812_v7 = vpop.f32.mrf.mxu1 }
 0x3af   :  { %v4116_v8 = vadd.f32 %v957_v50, %v812_v7  ;;  %1038 = vrot.lane.b32.xlu1 %v4114_v5, %s3579_s15  ;;  %v1027_v50 = vpop.f32.mrf.mxu0  ;;  %v187_v7 = vld [vmem:[%s4796_s1 + $0x2e8] sm:$0xff] }
 0x3b0   :  { %v3030_v10 = vpop.f32.mrf.mxu1 }
 0x3b1   :  { %v4120_v11 = vadd.f32 %v3086_v52, %v3030_v10  ;;  %1036 = vrot.lane.b32.xlu0 %v4116_v8, %s3579_s15 }
 0x3b2   :  { %v822_v13 = vpop.f32.mrf.mxu1 }
 0x3b3   :  { %v4124_v14 = vadd.f32 %v967_v54, %v822_v13  ;;  %1042 = vrot.lane.b32.xlu1 %v4120_v11, %s3579_s15 }
 0x3b4   :  { %v3033_v15 = vpop.f32.mrf.mxu1 }
 0x3b5   :  { %v4128_v16 = vadd.f32 %v3089_v56, %v3033_v15  ;;  %1040 = vrot.lane.b32.xlu0 %v4124_v14, %s3579_s15  ;;  %v184_v15 = vld [vmem:[%s4796_s1 + $0x2d0] sm:$0xff] }
 0x3b6   :  { %v832_v20 = vpop.f32.mrf.mxu1 }
 0x3b7   :  { %v4132_v21 = vadd.f32 %v977_v58, %v832_v20  ;;  %1046 = vrot.lane.b32.xlu1 %v4128_v16, %s3579_s15 }
 0x3b8   :  { %v3036_v22 = vpop.f32.mrf.mxu1 }
 0x3b9   :  { %v4136_v23 = vadd.f32 %v3092_v63, %v3036_v22  ;;  %1044 = vrot.lane.b32.xlu0 %v4132_v21, %s3579_s15 }
 0x3ba   :  { %v842_v24 = vpop.f32.mrf.mxu1 }
 0x3bb   :  { %v4140_v25 = vadd.f32 %v987_v3, %v842_v24  ;;  %1050 = vrot.lane.b32.xlu1 %v4136_v23, %s3579_s15  ;;  %v188_v3 = vld [vmem:[%s4796_s1 + $0x2f0] sm:$0xff] }
 0x3bc   :  { %v3039_v26 = vpop.f32.mrf.mxu1 }
 0x3bd   :  { %v4144_v27 = vadd.f32 %v3095_v6, %v3039_v26  ;;  %1048 = vrot.lane.b32.xlu0 %v4140_v25, %s3579_s15  ;;  %v181_v26 = vld [vmem:[%s4796_s1 + $0x2b8] sm:$0xff] }
 0x3be   :  { %v852_v29 = vpop.f32.mrf.mxu1 }
 0x3bf   :  { %v4148_v30 = vadd.f32 %v997_v12, %v852_v29  ;;  %1054 = vrot.lane.b32.xlu1 %v4144_v27, %s3579_s15  ;;  %v180_v29 = vld [vmem:[%s4796_s1 + $0x2b0] sm:$0xff] }
 0x3c0   :  { %v3042_v31 = vpop.f32.mrf.mxu1 }
 0x3c1   :  { %v4152_v32 = vadd.f32 %v3098_v18, %v3042_v31  ;;  %1052 = vrot.lane.b32.xlu0 %v4148_v30, %s3579_s15 }
 0x3c2   :  { %v862_v34 = vpop.f32.mrf.mxu1 }
 0x3c3   :  { %v4156_v35 = vadd.f32 %v1007_v19, %v862_v34  ;;  %1058 = vrot.lane.b32.xlu1 %v4152_v32, %s3579_s15  ;;  %v182_v19 = vld [vmem:[%s4796_s1 + $0x2c0] sm:$0xff] }
 0x3c4   :  { %v3045_v36 = vpop.f32.mrf.mxu1 }
 0x3c5   :  { %v4160_v38 = vadd.f32 %v3101_v28, %v3045_v36  ;;  %1056 = vrot.lane.b32.xlu0 %v4156_v35, %s3579_s15  ;;  %v178_v36 = vld [vmem:[%s4796_s1 + $0x2a0] sm:$0xff] }
 0x3c6   :  { %v872_v42 = vpop.f32.mrf.mxu1 }
 0x3c7   :  { %v4164_v44 = vadd.f32 %v1017_v33, %v872_v42  ;;  %1062 = vrot.lane.b32.xlu1 %v4160_v38, %s3579_s15  ;;  %v179_v33 = vld [vmem:[%s4796_s1 + $0x2a8] sm:$0xff]  ;;  %v177_v42 = vld [vmem:[%s4796_s1 + $0x298] sm:$0xff] }
 0x3c8   :  { %v3048_v46 = vpop.f32.mrf.mxu1 }
 0x3c9   :  { %v4168_v48 = vadd.f32 %v3104_v40, %v3048_v46  ;;  %1060 = vrot.lane.b32.xlu0 %v4164_v44, %s3579_s15 }
 0x3ca   :  { %v882_v52 = vpop.f32.mrf.mxu1 }
 0x3cb   :  { %v4172_v54 = vadd.f32 %v1027_v50, %v882_v52  ;;  %1066 = vrot.lane.b32.xlu1 %v4168_v48, %s3579_s15  ;;  %v176_v50 = vld [vmem:[%s4796_s1 + $0x290] sm:$0xff] }
 0x3cd   :  { %1064 = vrot.lane.b32.xlu0 %v4172_v54, %s3579_s15 }
 0x3cf   :  { %1541 = vrot.lane.b32.xlu1 %v3894_v37, %s3579_s15 }
 0x3d1   :  { %1539 = vrot.lane.b32.xlu0 %v3813_v9, %s3579_s15 }
 0x3d3   :  { %1545 = vrot.lane.b32.xlu1 %v3912_v41, %s3579_s15 }
 0x3d5   :  { %1543 = vrot.lane.b32.xlu0 %v3902_v39, %s3579_s15 }
 0x3d7   :  { %1549 = vrot.lane.b32.xlu1 %v3930_v45, %s3579_s15 }
 0x3d9   :  { %1547 = vrot.lane.b32.xlu0 %v3920_v43, %s3579_s15 }
 0x3db   :  { %1553 = vrot.lane.b32.xlu1 %v3948_v49, %s3579_s15 }
 0x3dd   :  { %1551 = vrot.lane.b32.xlu0 %v3938_v47, %s3579_s15 }
 0x3df   :  { %1557 = vrot.lane.b32.xlu1 %v3966_v53, %s3579_s15 }
 0x3e1   :  { %1555 = vrot.lane.b32.xlu0 %v3956_v51, %s3579_s15 }
 0x3e3   :  { %1561 = vrot.lane.b32.xlu1 %v3984_v57, %s3579_s15 }
 0x3e5   :  { %1559 = vrot.lane.b32.xlu0 %v3974_v55, %s3579_s15 }
 0x3e7   :  { %1565 = vrot.lane.b32.xlu1 %v4002_v61, %s3579_s15 }
 0x3e9   :  { %1563 = vrot.lane.b32.xlu0 %v3992_v59, %s3579_s15 }
 0x3eb   :  { %1569 = vrot.lane.b32.xlu1 %v4023_v2, %s3579_s15 }
 0x3ed   :  { %1567 = vrot.lane.b32.xlu0 %v4014_v0, %s3579_s15 }
 0x421   :  { %v1039_v56 = vpop.permute.xlu1 %1038 }
 0x422   :  { %v1069_v62 = vmul.f32 %v1039_v56, %v4114_v5  ;;  %v186_v5 = vld [vmem:[%s4796_s1 + $0x2e0] sm:$0xff]  ;;  %v175_v56 = vld [vmem:[%s4796_s1 + $0x288] sm:$0xff] }
 0x423   :  { %v1037_v58 = vpop.permute.xlu0 %1036 }
 0x424   :  { %v1068_v60 = vmul.f32 %v1037_v58, %v4116_v8  ;;  %v174_v58 = vld [vmem:[%s4796_s1 + $0x280] sm:$0xff] }
 0x425   :  { %v1043_v63 = vpop.permute.xlu1 %1042 }
 0x426   :  { %3137 = vmatprep.mubr.f32.mxu1 %v1068_v60  ;;  %v1071_v8 = vmul.f32 %v1043_v63, %v4120_v11 }
 0x427   :  { %3138 = vmatmul.mubr.f32.vlgmr.msra.gmra.mxu1 %v1069_v62  ;;  %v1041_v4 = vpop.permute.xlu0 %1040 }
 0x428   :  { %v1070_v6 = vmul.f32 %v1041_v4, %v4124_v14  ;;  %3218 = vmatpush3.msra.mxu1 %v4111_v1  ;;  %v185_v1 = vld [vmem:[%s4796_s1 + $0x2d8] sm:$0xff] }
 0x429   :  { %v1047_v10 = vpop.permute.xlu1 %1046  ;;  %3219 = vmatprep.subr.mxu1 %v188_v3 }
 0x42a   :  { %3140 = vmatprep.mubr.f32.mxu1 %v1070_v6  ;;  %3220 = vmatpush3.msra.mxu1 %v188_v3  ;;  %v1073_v11 = vmul.f32 %v1047_v10, %v4128_v16 }
 0x42b   :  { %3141 = vmatmul.mubr.f32.gmra.mxu1 %v1071_v8  ;;  %3221 = vmatprep.subr.mxu1 %v187_v7  ;;  %v1045_v12 = vpop.permute.xlu0 %1044 }
 0x42c   :  { %v1072_v13 = vmul.f32 %v1045_v12, %v4132_v21  ;;  %3222 = vmatpush3.msra.mxu1 %v187_v7  ;;  %v183_v21 = vld [vmem:[%s4796_s1 + $0x2c8] sm:$0xff] }
 0x42d   :  { %v1051_v14 = vpop.permute.xlu1 %1050  ;;  %3223 = vmatprep.subr.mxu1 %v186_v5 }
 0x42e   :  { %3143 = vmatprep.mubr.f32.mxu1 %v1072_v13  ;;  %3224 = vmatpush3.msra.mxu1 %v186_v5  ;;  %v1075_v16 = vmul.f32 %v1051_v14, %v4136_v23 }
 0x42f   :  { %3144 = vmatmul.mubr.f32.gmra.mxu1 %v1073_v11  ;;  %3225 = vmatprep.subr.mxu1 %v185_v1  ;;  %v1049_v18 = vpop.permute.xlu0 %1048 }
 0x430   :  { %v1074_v20 = vmul.f32 %v1049_v18, %v4140_v25  ;;  %3226 = vmatpush3.msra.mxu1 %v185_v1 }
 0x431   :  { %v1055_v22 = vpop.permute.xlu1 %1054  ;;  %3227 = vmatprep.subr.mxu1 %v184_v15 }
 0x432   :  { %3146 = vmatprep.mubr.f32.mxu1 %v1074_v20  ;;  %3228 = vmatpush3.msra.mxu1 %v184_v15  ;;  %v1077_v23 = vmul.f32 %v1055_v22, %v4144_v27 }
 0x433   :  { %3147 = vmatmul.mubr.f32.gmra.mxu1 %v1075_v16  ;;  %3229 = vmatprep.subr.mxu1 %v183_v21  ;;  %v1053_v24 = vpop.permute.xlu0 %1052 }
 0x434   :  { %v1076_v25 = vmul.f32 %v1053_v24, %v4148_v30  ;;  %3230 = vmatpush3.msra.mxu1 %v183_v21  ;;  %v1573_v21 = vsub.s32 4, %v3789_v17 }
 0x435   :  { %v1059_v28 = vpop.permute.xlu1 %1058  ;;  %3231 = vmatprep.subr.mxu1 %v182_v19 }
 0x436   :  { %3149 = vmatprep.mubr.f32.mxu1 %v1076_v25  ;;  %3232 = vmatpush3.msra.mxu1 %v182_v19  ;;  %v1079_v27 = vmul.f32 %v1059_v28, %v4152_v32  ;;  %v4362_v25 = vld [vmem:[%s4796_s1 + $0x480] sm:$0xff] }
 0x437   :  { %3150 = vmatmul.mubr.f32.gmra.mxu1 %v1077_v23  ;;  %3233 = vmatprep.subr.mxu1 %v181_v26  ;;  %v1057_v31 = vpop.permute.xlu0 %1056 }
 0x438   :  { %v1078_v30 = vmul.f32 %v1057_v31, %v4156_v35  ;;  %3234 = vmatpush3.msra.mxu1 %v181_v26  ;;  %v4365_v26 = vrot.slane %v4362_v25, %v1573_v21  ;;  %v1609_v31 = vsub.s32 3, %v3789_v17 }
 0x439   :  { %v1063_v34 = vpop.permute.xlu1 %1062  ;;  %3235 = vmatprep.subr.mxu1 %v180_v29 }
 0x43a   :  { %3152 = vmatprep.mubr.f32.mxu1 %v1078_v30  ;;  %3236 = vmatpush3.msra.mxu1 %v180_v29  ;;  %v1081_v32 = vmul.f32 %v1063_v34, %v4160_v38  ;;  %v207_v29 = vld [vmem:[%s4796_s1 + $0x388] sm:$0xff] }
 0x43b   :  { %3153 = vmatmul.mubr.f32.gmra.mxu1 %v1079_v27  ;;  %3237 = vmatprep.subr.mxu1 %v179_v33  ;;  %v1061_v40 = vpop.permute.xlu0 %1060  ;;  %v206_v27 = vld [vmem:[%s4796_s1 + $0x380] sm:$0xff] }
 0x43c   :  { %v1080_v35 = vmul.f32 %v1061_v40, %v4164_v44  ;;  %3238 = vmatpush3.msra.mxu1 %v179_v33 }
 0x43d   :  { %3239 = vmatprep.subr.mxu1 %v178_v36  ;;  %v1067_v46 = vpop.permute.xlu1 %1066 }
 0x43e   :  { %3155 = vmatprep.mubr.f32.mxu1 %v1080_v35  ;;  %3240 = vmatpush3.msra.mxu1 %v178_v36  ;;  %v1083_v38 = vmul.f32 %v1067_v46, %v4168_v48 }
 0x43f   :  { %3156 = vmatmul.mubr.f32.gmra.mxu1 %v1081_v32  ;;  %3241 = vmatprep.subr.mxu1 %v177_v42  ;;  %v1065_v52 = vpop.permute.xlu0 %1064  ;;  %v4381_v32 = vrot.slane %v4362_v25, %v1609_v31 }
 0x440   :  { %v1082_v44 = vmul.f32 %v1065_v52, %v4172_v54  ;;  %3242 = vmatpush3.msra.mxu1 %v177_v42 }
 0x441   :  { %3243 = vmatprep.subr.mxu1 %v176_v50  ;;  %v1542_v7 = vpop.permute.xlu1 %1541 }
 0x442   :  { %3158 = vmatprep.mubr.f32.mxu1 %v1082_v44  ;;  %3244 = vmatpush3.msra.mxu1 %v176_v50  ;;  %v1576_v34 = vmul.f32 %v4365_v26, %v1542_v7 }
 0x443   :  { %3159 = vmatmul.mubr.f32.gmra.mxu1 %v1083_v38  ;;  %3245 = vmatprep.subr.mxu1 %v175_v56  ;;  %v1540_v5 = vpop.permute.xlu0 %1539 }
 0x444   :  { %3246 = vmatpush3.msra.mxu1 %v175_v56  ;;  %3249 = vmatprep.mubr.f32.mxu1 %v3813_v9  ;;  %v221_v9 = vld [vmem:[%s4796_s1 + $0x3f8] sm:$0xff]  ;;  %v1575_v42 = vmul.f32 %v4365_v26, %v1540_v5 }
 0x445   :  { %3247 = vmatprep.subr.mxu1 %v174_v58  ;;  %3273 = vmatprep.subr.mxu0 %v221_v9  ;;  %v1546_v11 = vpop.permute.xlu1 %1545 }
 0x446   :  { %3248 = vmatpush3.msra.mxu1 %v174_v58  ;;  %3274 = vmatpush3.msra.mxu0 %v221_v9  ;;  %v1578_v38 = vmul.f32 %v4365_v26, %v1546_v11 }
 0x447   :  { %3250 = vmatmul.mubr.f32.vlgmr.msra.gmra.mxu1 %v3894_v37  ;;  %v220_v37 = vld [vmem:[%s4796_s1 + $0x3f0] sm:$0xff]  ;;  %v1544_v15 = vpop.permute.xlu0 %1543 }
 0x448   :  { %3252 = vmatprep.mubr.f32.mxu1 %v3902_v39  ;;  %v219_v39 = vld [vmem:[%s4796_s1 + $0x3e8] sm:$0xff]  ;;  %3275 = vmatprep.subr.mxu0 %v220_v37 }
 0x449   :  { %3276 = vmatpush3.msra.mxu0 %v220_v37  ;;  %v1550_v22 = vpop.permute.xlu1 %1549 }
 0x44a   :  { %3277 = vmatprep.subr.mxu0 %v219_v39 }
 0x44b   :  { %3253 = vmatmul.mubr.f32.gmra.mxu1 %v3912_v41  ;;  %v218_v41 = vld [vmem:[%s4796_s1 + $0x3e0] sm:$0xff]  ;;  %3278 = vmatpush3.msra.mxu0 %v219_v39  ;;  %v1548_v23 = vpop.permute.xlu0 %1547  ;;  %v1577_v39 = vmul.f32 %v4365_v26, %v1544_v15 }
 0x44c   :  { %3255 = vmatprep.mubr.f32.mxu1 %v3920_v43  ;;  %v217_v43 = vld [vmem:[%s4796_s1 + $0x3d8] sm:$0xff]  ;;  %3279 = vmatprep.subr.mxu0 %v218_v41 }
 0x44d   :  { %3280 = vmatpush3.msra.mxu0 %v218_v41  ;;  %v1554_v36 = vpop.permute.xlu1 %1553 }
 0x44e   :  { %3281 = vmatprep.subr.mxu0 %v217_v43  ;;  %v1582_v21 = vmul.f32 %v4365_v26, %v1554_v36 }
 0x44f   :  { %3256 = vmatmul.mubr.f32.gmra.mxu1 %v3930_v45  ;;  %v216_v45 = vld [vmem:[%s4796_s1 + $0x3d0] sm:$0xff]  ;;  %3282 = vmatpush3.msra.mxu0 %v217_v43  ;;  %v1552_v46 = vpop.permute.xlu0 %1551 }
 0x450   :  { %3258 = vmatprep.mubr.f32.mxu1 %v3938_v47  ;;  %v215_v47 = vld [vmem:[%s4796_s1 + $0x3c8] sm:$0xff]  ;;  %3283 = vmatprep.subr.mxu0 %v216_v45 }
 0x451   :  { %3284 = vmatpush3.msra.mxu0 %v216_v45  ;;  %v1558_v43 = vpop.permute.xlu1 %1557 }
 0x452   :  { %3285 = vmatprep.subr.mxu0 %v215_v47 }
 0x453   :  { %3259 = vmatmul.mubr.f32.gmra.mxu1 %v3948_v49  ;;  %v214_v49 = vld [vmem:[%s4796_s1 + $0x3c0] sm:$0xff]  ;;  %3286 = vmatpush3.msra.mxu0 %v215_v47 }
 0x454   :  { %3261 = vmatprep.mubr.f32.mxu1 %v3956_v51  ;;  %v213_v51 = vld [vmem:[%s4796_s1 + $0x3b8] sm:$0xff]  ;;  %3287 = vmatprep.subr.mxu0 %v214_v49 }
 0x455   :  { %3288 = vmatpush3.msra.mxu0 %v214_v49  ;;  %v1580_v49 = vmul.f32 %v4365_v26, %v1550_v22 }
 0x456   :  { %3289 = vmatprep.subr.mxu0 %v213_v51 }
 0x457   :  { %3262 = vmatmul.mubr.f32.gmra.mxu1 %v3966_v53  ;;  %v212_v53 = vld [vmem:[%s4796_s1 + $0x3b0] sm:$0xff]  ;;  %3290 = vmatpush3.msra.mxu0 %v213_v51 }
 0x458   :  { %3264 = vmatprep.mubr.f32.mxu1 %v3974_v55  ;;  %v211_v55 = vld [vmem:[%s4796_s1 + $0x3a8] sm:$0xff]  ;;  %3291 = vmatprep.subr.mxu0 %v212_v53 }
 0x459   :  { %3292 = vmatpush3.msra.mxu0 %v212_v53 }
 0x45a   :  { %3293 = vmatprep.subr.mxu0 %v211_v55 }
 0x45b   :  { %3265 = vmatmul.mubr.f32.gmra.mxu1 %v3984_v57  ;;  %v210_v57 = vld [vmem:[%s4796_s1 + $0x3a0] sm:$0xff]  ;;  %3294 = vmatpush3.msra.mxu0 %v211_v55 }
 0x45c   :  { %3267 = vmatprep.mubr.f32.mxu1 %v3992_v59  ;;  %v209_v59 = vld [vmem:[%s4796_s1 + $0x398] sm:$0xff]  ;;  %3295 = vmatprep.subr.mxu0 %v210_v57 }
 0x45d   :  { %3296 = vmatpush3.msra.mxu0 %v210_v57 }
 0x45e   :  { %3297 = vmatprep.subr.mxu0 %v209_v59 }
 0x45f   :  { %3268 = vmatmul.mubr.f32.gmra.mxu1 %v4002_v61  ;;  %v208_v61 = vld [vmem:[%s4796_s1 + $0x390] sm:$0xff]  ;;  %3298 = vmatpush3.msra.mxu0 %v209_v59  ;;  %v1556_v59 = vpop.permute.xlu0 %1555 }
 0x460   :  { %3270 = vmatprep.mubr.f32.mxu1 %v4014_v0  ;;  %3299 = vmatprep.subr.mxu0 %v208_v61 }
 0x461   :  { %3300 = vmatpush3.msra.mxu0 %v208_v61 }
 0x462   :  { %3301 = vmatprep.subr.mxu0 %v207_v29 }
 0x463   :  { %3271 = vmatmul.mubr.f32.gmra.mxu1 %v4023_v2  ;;  %v3195_v2 = vpop.f32.mrf.mxu0  ;;  %3302 = vmatpush3.msra.mxu0 %v207_v29 }
 0x464   :  { %3303 = vmatprep.subr.mxu0 %v206_v27 }
 0x465   :  { %v1315_v60 = vpop.f32.mrf.mxu0  ;;  %3304 = vmatpush3.msra.mxu0 %v206_v27  ;;  %v1562_v27 = vpop.permute.xlu1 %1561 }
 0x467   :  { %v3198_v3 = vpop.f32.mrf.mxu0 }
 0x469   :  { %v1325_v8 = vpop.f32.mrf.mxu0 }
 0x46b   :  { %v3201_v13 = vpop.f32.mrf.mxu0 }
 0x46d   :  { %v1335_v18 = vpop.f32.mrf.mxu0 }
 0x46f   :  { %v3204_v19 = vpop.f32.mrf.mxu0 }
 0x471   :  { %v1345_v30 = vpop.f32.mrf.mxu0 }
 0x473   :  { %v3207_v50 = vpop.f32.mrf.mxu0 }
 0x475   :  { %v1355_v45 = vpop.f32.mrf.mxu0 }
 0x477   :  { %v3210_v11 = vpop.f32.mrf.mxu0 }
 0x479   :  { %v1365_v36 = vpop.f32.mrf.mxu0 }
 0x4e7   :  { %v4330_v0 = vpop.f32.mrf.mxu1 }
 0x4e9   :  { %v4332_v48 = vpop.f32.mrf.mxu1 }
 0x4eb   :  { %v4334_v54 = vpop.f32.mrf.mxu1 }
 0x4ed   :  { %v4336_v62 = vpop.f32.mrf.mxu1 }
 0x4ef   :  { %v4338_v63 = vpop.f32.mrf.mxu1 }
 0x4f1   :  { %v4340_v4 = vpop.f32.mrf.mxu1 }
 0x4f3   :  { %v4342_v6 = vpop.f32.mrf.mxu1 }
 0x4f5   :  { %v4344_v10 = vpop.f32.mrf.mxu1 }
 0x4f7   :  { %v4346_v12 = vpop.f32.mrf.mxu1 }
 0x4f9   :  { %v4348_v1 = vpop.f32.mrf.mxu1 }
 0x4fb   :  { %v4350_v14 = vpop.f32.mrf.mxu1 }
 0x4fd   :  { %v4352_v20 = vpop.f32.mrf.mxu1 }
 0x4ff   :  { %v4355_v16 = vpop.f32.mrf.mxu1 }
 0x501   :  { %v4357_v24 = vpop.f32.mrf.mxu1 }
 0x503   :  { %v4367_v28 = vpop.f32.mrf.mxu1 }
 0x505   :  { %v4373_v33 = vpop.f32.mrf.mxu1 }
 0x507   :  { %v3251_v40 = vpop.f32.mrf.mxu1 }
 0x508   :  { %v1466_v35 = vadd.f32 %v3251_v40, %v3195_v2  ;;  %v1579_v2 = vmul.f32 %v4365_v26, %v1548_v23 }
 0x509   :  { %v1460_v52 = vpop.f32.mrf.mxu1 }
 0x50a   :  { %v1592_v44 = vadd.f32 %v1576_v34, %v1466_v35  ;;  %v1461_v56 = vadd.f32 %v1460_v52, %v1315_v60  ;;  %v1560_v52 = vpop.permute.xlu0 %1559 }
 0x50b   :  { %v3254_v58 = vpop.f32.mrf.mxu1 }
 0x50c   :  { %v1591_v9 = vadd.f32 %v1575_v42, %v1461_v56  ;;  %v1476_v37 = vadd.f32 %v3254_v58, %v3198_v3  ;;  %v1612_v41 = vadd.f32 %v4381_v32, %v1592_v44 }
 0x50d   :  { %v1470_v47 = vpop.f32.mrf.mxu1 }
 0x50e   :  { %v1594_v51 = vadd.f32 %v1578_v38, %v1476_v37  ;;  %v1471_v53 = vadd.f32 %v1470_v47, %v1325_v8  ;;  %v1628_v55 = vmax.f32 %v1612_v41, 0.0  ;;  %v1611_v57 = vadd.f32 %v4381_v32, %v1591_v9 }
 0x50f   :  { %v3257_v61 = vpop.f32.mrf.mxu1 }
 0x510   :  { %v1593_v60 = vadd.f32 %v1577_v39, %v1471_v53  ;;  %v1486_v3 = vadd.f32 %v3257_v61, %v3201_v13  ;;  %1645 = vrot.lane.b32.xlu1 %v1628_v55, %s3579_s15  ;;  %v1627_v7 = vmax.f32 %v1611_v57, 0.0  ;;  %v1614_v5 = vadd.f32 %v4381_v32, %v1594_v51  ;;  %v3213_v51 = vpop.f32.mrf.mxu0 }
 0x511   :  { %v1480_v15 = vpop.f32.mrf.mxu1  ;;  %v1581_v13 = vmul.f32 %v4365_v26, %v1552_v46 }
 0x512   :  { %v1596_v22 = vadd.f32 %v1580_v49, %v1486_v3  ;;  %v1481_v8 = vadd.f32 %v1480_v15, %v1335_v18  ;;  %1643 = vrot.lane.b32.xlu0 %v1627_v7, %s3579_s15  ;;  %v1630_v29 = vmax.f32 %v1614_v5, 0.0  ;;  %v1613_v31 = vadd.f32 %v4381_v32, %v1593_v60  ;;  %v1566_v49 = vpop.permute.xlu1 %1565  ;;  %v1375_v15 = vpop.f32.mrf.mxu0 }
 0x513   :  { %v3260_v23 = vpop.f32.mrf.mxu1  ;;  %v1584_v18 = vmul.f32 %v4365_v26, %v1558_v43 }
 0x514   :  { %v1595_v34 = vadd.f32 %v1579_v2, %v1481_v8  ;;  %v1496_v40 = vadd.f32 %v3260_v23, %v3204_v19  ;;  %1649 = vrot.lane.b32.xlu1 %v1630_v29, %s3579_s15  ;;  %v1629_v35 = vmax.f32 %v1613_v31, 0.0  ;;  %v1616_v42 = vadd.f32 %v4381_v32, %v1596_v22 }
 0x515   :  { %v1490_v44 = vpop.f32.mrf.mxu1  ;;  %v1583_v19 = vmul.f32 %v4365_v26, %v1556_v59  ;;  %v1564_v59 = vpop.permute.xlu0 %1563 }
 0x516   :  { %v1598_v56 = vadd.f32 %v1582_v21, %v1496_v40  ;;  %v1491_v38 = vadd.f32 %v1490_v44, %v1345_v30  ;;  %1647 = vrot.lane.b32.xlu0 %v1629_v35, %s3579_s15  ;;  %v1632_v58 = vmax.f32 %v1616_v42, 0.0  ;;  %v1615_v9 = vadd.f32 %v4381_v32, %v1595_v34 }
 0x517   :  { %v3263_v46 = vpop.f32.mrf.mxu1  ;;  %v1586_v30 = vmul.f32 %v4365_v26, %v1562_v27  ;;  %v1570_v27 = vpop.permute.xlu1 %1569 }
 0x518   :  { %v1597_v37 = vadd.f32 %v1581_v13, %v1491_v38  ;;  %v1506_v39 = vadd.f32 %v3263_v46, %v3207_v50  ;;  %1653 = vrot.lane.b32.xlu1 %v1632_v58, %s3579_s15  ;;  %v1631_v41 = vmax.f32 %v1615_v9, 0.0  ;;  %v1618_v47 = vadd.f32 %v4381_v32, %v1598_v56 }
 0x519   :  { %v1500_v43 = vpop.f32.mrf.mxu1  ;;  %v1585_v50 = vmul.f32 %v4365_v26, %v1560_v52  ;;  %v1568_v42 = vpop.permute.xlu0 %1567 }
 0x51a   :  { %v1600_v53 = vadd.f32 %v1584_v18, %v1506_v39  ;;  %v1501_v55 = vadd.f32 %v1500_v43, %v1355_v45  ;;  %1651 = vrot.lane.b32.xlu0 %v1631_v41, %s3579_s15  ;;  %v1634_v57 = vmax.f32 %v1618_v47, 0.0  ;;  %v1617_v61 = vadd.f32 %v4381_v32, %v1597_v37  ;;  %v3216_v52 = vpop.f32.mrf.mxu0 }
 0x51b   :  { %v3266_v2 = vpop.f32.mrf.mxu1  ;;  %v1588_v45 = vmul.f32 %v4365_v26, %v1566_v49  ;;  %v1589_v46 = vmul.f32 %v4365_v26, %v1568_v42 }
 0x51c   :  { %v1599_v60 = vadd.f32 %v1583_v19, %v1501_v55  ;;  %v1516_v3 = vadd.f32 %v3266_v2, %v3210_v11  ;;  %1657 = vrot.lane.b32.xlu1 %v1634_v57, %s3579_s15  ;;  %v1633_v7 = vmax.f32 %v1617_v61, 0.0  ;;  %v1620_v5 = vadd.f32 %v4381_v32, %v1600_v53  ;;  %v1385_v47 = vpop.f32.mrf.mxu0 }
 0x51d   :  { %v1510_v21 = vpop.f32.mrf.mxu1  ;;  %v1587_v11 = vmul.f32 %v4365_v26, %v1564_v59 }
 0x51e   :  { %v1602_v22 = vadd.f32 %v1586_v30, %v1516_v3  ;;  %v1511_v8 = vadd.f32 %v1510_v21, %v1365_v36  ;;  %1655 = vrot.lane.b32.xlu0 %v1633_v7, %s3579_s15  ;;  %v1636_v29 = vmax.f32 %v1620_v5, 0.0  ;;  %v1619_v31 = vadd.f32 %v4381_v32, %v1599_v60 }
 0x51f   :  { %v3269_v23 = vpop.f32.mrf.mxu1  ;;  %v1590_v36 = vmul.f32 %v4365_v26, %v1570_v27 }
 0x520   :  { %v1601_v13 = vadd.f32 %v1585_v50, %v1511_v8  ;;  %v1526_v34 = vadd.f32 %v3269_v23, %v3213_v51  ;;  %1661 = vrot.lane.b32.xlu1 %v1636_v29, %s3579_s15  ;;  %v1635_v40 = vmax.f32 %v1619_v31, 0.0  ;;  %v1622_v35 = vadd.f32 %v4381_v32, %v1602_v22 }
 0x521   :  { %v1520_v44 = vpop.f32.mrf.mxu1  ;;  %v1086_v50 = vsub.s32 2, %v3789_v17 }
 0x522   :  { %v1604_v18 = vadd.f32 %v1588_v45, %v1526_v34  ;;  %v1521_v56 = vadd.f32 %v1520_v44, %v1375_v15  ;;  %1659 = vrot.lane.b32.xlu0 %v1635_v40, %s3579_s15  ;;  %v1638_v38 = vmax.f32 %v1622_v35, 0.0  ;;  %v1621_v58 = vadd.f32 %v4381_v32, %v1601_v13 }
 0x523   :  { %v3272_v9 = vpop.f32.mrf.mxu1  ;;  %v4431_v60 = vrot.slane %v4362_v25, %v1086_v50 }
 0x524   :  { %v1603_v19 = vadd.f32 %v1587_v11, %v1521_v56  ;;  %v1536_v37 = vadd.f32 %v3272_v9, %v3216_v52  ;;  %1665 = vrot.lane.b32.xlu1 %v1638_v38, %s3579_s15  ;;  %v1637_v39 = vmax.f32 %v1621_v58, 0.0  ;;  %v1624_v41 = vadd.f32 %v4381_v32, %v1604_v18 }
 0x525   :  { %v1530_v49 = vpop.f32.mrf.mxu1  ;;  %v1155_v3 = vadd.f32 %v4332_v48, %v4431_v60  ;;  %v1160_v7 = vadd.f32 %v4330_v0, %v4431_v60  ;;  %v1170_v45 = vadd.f32 %v4334_v54, %v4431_v60  ;;  %v1175_v48 = vadd.f32 %v4340_v4, %v4431_v60 }
 0x526   :  { %v1606_v51 = vadd.f32 %v1590_v36, %v1536_v37  ;;  %v1531_v43 = vadd.f32 %v1530_v49, %v1385_v47  ;;  %1663 = vrot.lane.b32.xlu0 %v1637_v39, %s3579_s15  ;;  %v1640_v30 = vmax.f32 %v1624_v41, 0.0  ;;  %v1623_v53 = vadd.f32 %v4381_v32, %v1603_v19 }
 0x527   :  { %v1233_v15 = vmax.f32 %v1155_v3, 0.0  ;;  %v1234_v21 = vmax.f32 %v1160_v7, 0.0  ;;  %v1236_v23 = vmax.f32 %v1170_v45, 0.0  ;;  %v1180_v0 = vadd.f32 %v4338_v63, %v4431_v60 }
 0x528   :  { %v1605_v55 = vadd.f32 %v1589_v46, %v1531_v43  ;;  %1669 = vrot.lane.b32.xlu1 %v1640_v30, %s3579_s15  ;;  %v1639_v26 = vmax.f32 %v1623_v53, 0.0  ;;  %v1626_v57 = vadd.f32 %v4381_v32, %v1606_v51  ;;  %v1237_v40 = vmax.f32 %v1175_v48, 0.0  ;;  %v234_v48 = vld [vmem:[%s4796_s1 + $0x460] sm:$0xff] }
 0x529   :  { %v1185_v54 = vadd.f32 %v4344_v10, %v4431_v60  ;;  %v1238_v35 = vmax.f32 %v1180_v0, 0.0  ;;  %v1190_v42 = vadd.f32 %v4342_v6, %v4431_v60  ;;  %v1195_v18 = vadd.f32 %v4348_v1, %v4431_v60 }
 0x52a   :  { %1667 = vrot.lane.b32.xlu0 %v1639_v26, %s3579_s15  ;;  %v1642_v61 = vmax.f32 %v1626_v57, 0.0  ;;  %v1625_v59 = vadd.f32 %v4381_v32, %v1605_v55  ;;  %v1165_v32 = vadd.f32 %v4336_v62, %v4431_v60  ;;  %v1200_v38 = vadd.f32 %v4346_v12, %v4431_v60 }
 0x52b   :  { %v1239_v63 = vmax.f32 %v1185_v54, 0.0  ;;  %v1240_v56 = vmax.f32 %v1190_v42, 0.0  ;;  %v1241_v6 = vmax.f32 %v1195_v18, 0.0  ;;  %v1205_v19 = vadd.f32 %v4352_v20, %v4431_v60  ;;  %v86_v42 = vld [vmem:[%s4795_s0 + $0x258] sm:$0xff] }
 0x52c   :  { %1673 = vrot.lane.b32.xlu1 %v1642_v61, %s3579_s15  ;;  %v1641_v2 = vmax.f32 %v1625_v59, 0.0  ;;  %v1235_v27 = vmax.f32 %v1165_v32, 0.0  ;;  %v1242_v37 = vmax.f32 %v1200_v38, 0.0  ;;  %v1210_v39 = vadd.f32 %v4350_v14, %v4431_v60  ;;  %v84_v38 = vld [vmem:[%s4795_s0 + $0x248] sm:$0xff] }
 0x52d   :  { %v1243_v12 = vmax.f32 %v1205_v19, 0.0  ;;  %v1215_v51 = vadd.f32 %v4357_v24, %v4431_v60  ;;  %v1220_v30 = vadd.f32 %v4355_v16, %v4431_v60  ;;  %v1225_v57 = vadd.f32 %v4373_v33, %v4431_v60 }
 0x52e   :  { %1671 = vrot.lane.b32.xlu0 %v1641_v2, %s3579_s15  ;;  %v1244_v43 = vmax.f32 %v1210_v39, 0.0  ;;  %v1230_v59 = vadd.f32 %v4367_v28, %v4431_v60  ;;  %v1693_v33 = vsub.s32 5, %v3789_v17  ;;  %v92_v28 = vld [vmem:[%s4795_s0 + $0x288] sm:$0xff]  ;;  %v237_v60 = vld [vmem:[%s4796_s1 + $0x478] sm:$0xff]  ;;  %v236_v17 = vld [vmem:[%s4796_s1 + $0x470] sm:$0xff] }
 0x52f   :  { %v1245_v14 = vmax.f32 %v1215_v51, 0.0  ;;  %v1246_v61 = vmax.f32 %v1220_v30, 0.0  ;;  %v1247_v3 = vmax.f32 %v1225_v57, 0.0  ;;  %3385 = vmatprep.subr.mxu0 %v92_v28  ;;  %3329 = vmatprep.subr.mxu1 %v237_v60  ;;  %v228_v39 = vld [vmem:[%s4796_s1 + $0x430] sm:$0xff]  ;;  %v225_v57 = vld [vmem:[%s4796_s1 + $0x418] sm:$0xff] }
 0x530   :  { %v1248_v7 = vmax.f32 %v1230_v59, 0.0  ;;  %v4476_v45 = vrot.slane %v4362_v25, %v1693_v33  ;;  %3330 = vmatpush3.msra.mxu1 %v237_v60  ;;  %v235_v25 = vld [vmem:[%s4796_s1 + $0x468] sm:$0xff]  ;;  %v81_v51 = vld [vmem:[%s4795_s0 + $0x230] sm:$0xff]  ;;  %v79_v59 = vld [vmem:[%s4795_s0 + $0x220] sm:$0xff] }
 0x531   :  { %3331 = vmatprep.subr.mxu1 %v236_v17  ;;  %v222_v60 = vld [vmem:[%s4796_s1 + $0x400] sm:$0xff] }
 0x532   :  { %3332 = vmatpush3.msra.mxu1 %v236_v17  ;;  %v46_v17 = vld [vmem:[%s4795_s0 + $0x118] sm:$0xff] }
 0x533   :  { %3333 = vmatprep.subr.mxu1 %v235_v25 }
 0x534   :  { %3334 = vmatpush3.msra.mxu1 %v235_v25  ;;  %v49_v25 = vld [vmem:[%s4795_s0 + $0x130] sm:$0xff] }
 0x535   :  { %3335 = vmatprep.subr.mxu1 %v234_v48 }
 0x536   :  { %3336 = vmatpush3.msra.mxu1 %v234_v48  ;;  %v52_v48 = vld [vmem:[%s4795_s0 + $0x148] sm:$0xff] }
 0x582   :  { %v1646_v5 = vpop.permute.xlu1 %1645 }
 0x583   :  { %v1676_v29 = vadd.f32 %v1646_v5, %v1234_v21  ;;  %v91_v21 = vld [vmem:[%s4795_s0 + $0x280] sm:$0xff] }
 0x584   :  { %v1644_v22 = vpop.permute.xlu0 %1643 }
 0x585   :  { %v1675_v8 = vadd.f32 %v1644_v22, %v1233_v15  ;;  %v90_v22 = vld [vmem:[%s4795_s0 + $0x278] sm:$0xff] }
 0x586   :  { %v1650_v31 = vpop.permute.xlu1 %1649 }
 0x587   :  { %3305 = vmatprep.mubr.f32.mxu0 %v1675_v8  ;;  %v1678_v13 = vadd.f32 %v1650_v31, %v1236_v23  ;;  %v88_v23 = vld [vmem:[%s4795_s0 + $0x268] sm:$0xff] }
 0x588   :  { %3306 = vmatmul.mubr.f32.vlgmr.msra.gmra.mxu0 %v1676_v29  ;;  %v1648_v11 = vpop.permute.xlu0 %1647  ;;  %v89_v29 = vld [vmem:[%s4795_s0 + $0x270] sm:$0xff] }
 0x589   :  { %v1677_v62 = vadd.f32 %v1648_v11, %v1235_v27  ;;  %3386 = vmatpush3.msra.mxu0 %v92_v28  ;;  %v43_v28 = vld [vmem:[%s4795_s0 + $0x100] sm:$0xff] }
 0x58a   :  { %v1654_v34 = vpop.permute.xlu1 %1653  ;;  %3387 = vmatprep.subr.mxu0 %v91_v21 }
 0x58b   :  { %3308 = vmatprep.mubr.f32.mxu0 %v1677_v62  ;;  %v1680_v44 = vadd.f32 %v1654_v34, %v1238_v35  ;;  %3388 = vmatpush3.msra.mxu0 %v91_v21  ;;  %v233_v62 = vld [vmem:[%s4796_s1 + $0x458] sm:$0xff]  ;;  %v232_v35 = vld [vmem:[%s4796_s1 + $0x450] sm:$0xff]  ;;  %v44_v21 = vld [vmem:[%s4795_s0 + $0x108] sm:$0xff] }
 0x58c   :  { %3309 = vmatmul.mubr.f32.gmra.mxu0 %v1678_v13  ;;  %v1652_v4 = vpop.permute.xlu0 %1651  ;;  %3389 = vmatprep.subr.mxu0 %v90_v22  ;;  %v87_v13 = vld [vmem:[%s4795_s0 + $0x260] sm:$0xff] }
 0x58d   :  { %v1679_v52 = vadd.f32 %v1652_v4, %v1237_v40  ;;  %3390 = vmatpush3.msra.mxu0 %v90_v22  ;;  %3337 = vmatprep.subr.mxu1 %v233_v62  ;;  %v47_v22 = vld [vmem:[%s4795_s0 + $0x120] sm:$0xff] }
 0x58e   :  { %v1658_v36 = vpop.permute.xlu1 %1657  ;;  %3391 = vmatprep.subr.mxu0 %v89_v29  ;;  %3338 = vmatpush3.msra.mxu1 %v233_v62  ;;  %v55_v62 = vld [vmem:[%s4795_s0 + $0x160] sm:$0xff] }
 0x58f   :  { %3311 = vmatprep.mubr.f32.mxu0 %v1679_v52  ;;  %v1682_v9 = vadd.f32 %v1658_v36, %v1240_v56  ;;  %3392 = vmatpush3.msra.mxu0 %v89_v29  ;;  %v85_v36 = vld [vmem:[%s4795_s0 + $0x250] sm:$0xff]  ;;  %v230_v56 = vld [vmem:[%s4796_s1 + $0x440] sm:$0xff]  ;;  %v50_v29 = vld [vmem:[%s4795_s0 + $0x138] sm:$0xff] }
 0x590   :  { %3312 = vmatmul.mubr.f32.gmra.mxu0 %v1680_v44  ;;  %v1656_v10 = vpop.permute.xlu0 %1655  ;;  %3393 = vmatprep.subr.mxu0 %v88_v23  ;;  %v231_v44 = vld [vmem:[%s4796_s1 + $0x448] sm:$0xff] }
 0x591   :  { %v1681_v58 = vadd.f32 %v1656_v10, %v1239_v63  ;;  %3394 = vmatpush3.msra.mxu0 %v88_v23  ;;  %3339 = vmatprep.subr.mxu1 %v232_v35  ;;  %v53_v23 = vld [vmem:[%s4795_s0 + $0x150] sm:$0xff] }
 0x592   :  { %v1662_v46 = vpop.permute.xlu1 %1661  ;;  %3395 = vmatprep.subr.mxu0 %v87_v13  ;;  %3340 = vmatpush3.msra.mxu1 %v232_v35  ;;  %v58_v35 = vld [vmem:[%s4795_s0 + $0x178] sm:$0xff] }
 0x593   :  { %3314 = vmatprep.mubr.f32.mxu0 %v1681_v58  ;;  %v1684_v47 = vadd.f32 %v1662_v46, %v1242_v37  ;;  %3396 = vmatpush3.msra.mxu0 %v87_v13  ;;  %v56_v13 = vld [vmem:[%s4795_s0 + $0x168] sm:$0xff] }
 0x594   :  { %3315 = vmatmul.mubr.f32.gmra.mxu0 %v1682_v9  ;;  %v1660_v1 = vpop.permute.xlu0 %1659  ;;  %3397 = vmatprep.subr.mxu0 %v86_v42  ;;  %v229_v9 = vld [vmem:[%s4796_s1 + $0x438] sm:$0xff] }
 0x595   :  { %v1683_v41 = vadd.f32 %v1660_v1, %v1241_v6  ;;  %3398 = vmatpush3.msra.mxu0 %v86_v42  ;;  %3341 = vmatprep.subr.mxu1 %v231_v44  ;;  %v83_v6 = vld [vmem:[%s4795_s0 + $0x240] sm:$0xff] }
 0x596   :  { %v1666_v49 = vpop.permute.xlu1 %1665  ;;  %3399 = vmatprep.subr.mxu0 %v85_v36  ;;  %3342 = vmatpush3.msra.mxu1 %v231_v44 }
 0x597   :  { %3317 = vmatprep.mubr.f32.mxu0 %v1683_v41  ;;  %v1686_v55 = vadd.f32 %v1666_v49, %v1244_v43  ;;  %3400 = vmatpush3.msra.mxu0 %v85_v36  ;;  %v82_v41 = vld [vmem:[%s4795_s0 + $0x238] sm:$0xff] }
 0x598   :  { %3318 = vmatmul.mubr.f32.gmra.mxu0 %v1684_v47  ;;  %v1664_v20 = vpop.permute.xlu0 %1663  ;;  %3343 = vmatprep.subr.mxu1 %v230_v56 }
 0x599   :  { %v1685_v53 = vadd.f32 %v1664_v20, %v1243_v12  ;;  %3401 = vmatprep.subr.mxu0 %v84_v38  ;;  %3344 = vmatpush3.msra.mxu1 %v230_v56  ;;  %v227_v12 = vld [vmem:[%s4796_s1 + $0x428] sm:$0xff]  ;;  %v226_v20 = vld [vmem:[%s4796_s1 + $0x420] sm:$0xff] }
 0x59a   :  { %v1670_v26 = vpop.permute.xlu1 %1669  ;;  %3402 = vmatpush3.msra.mxu0 %v84_v38  ;;  %3345 = vmatprep.subr.mxu1 %v229_v9 }
 0x59b   :  { %3320 = vmatprep.mubr.f32.mxu0 %v1685_v53  ;;  %v1688_v50 = vadd.f32 %v1670_v26, %v1246_v61  ;;  %3403 = vmatprep.subr.mxu0 %v83_v6 }
 0x59c   :  { %3321 = vmatmul.mubr.f32.gmra.mxu0 %v1686_v55  ;;  %v1668_v24 = vpop.permute.xlu0 %1667  ;;  %3346 = vmatpush3.msra.mxu1 %v229_v9  ;;  %v80_v55 = vld [vmem:[%s4795_s0 + $0x228] sm:$0xff] }
 0x59d   :  { %v1687_v2 = vadd.f32 %v1668_v24, %v1245_v14  ;;  %3404 = vmatpush3.msra.mxu0 %v83_v6  ;;  %3347 = vmatprep.subr.mxu1 %v228_v39 }
 0x59e   :  { %v1674_v16 = vpop.permute.xlu1 %1673  ;;  %3405 = vmatprep.subr.mxu0 %v82_v41  ;;  %3348 = vmatpush3.msra.mxu1 %v228_v39 }
 0x59f   :  { %3323 = vmatprep.mubr.f32.mxu0 %v1687_v2  ;;  %v1690_v32 = vadd.f32 %v1674_v16, %v1248_v7  ;;  %3406 = vmatpush3.msra.mxu0 %v82_v41 }
 0x5a0   :  { %3324 = vmatmul.mubr.f32.gmra.mxu0 %v1688_v50  ;;  %v1672_v5 = vpop.permute.xlu0 %1671  ;;  %3349 = vmatprep.subr.mxu1 %v227_v12  ;;  %v224_v50 = vld [vmem:[%s4796_s1 + $0x410] sm:$0xff] }
 0x5a1   :  { %v1689_v15 = vadd.f32 %v1672_v5, %v1247_v3  ;;  %3407 = vmatprep.subr.mxu0 %v81_v51  ;;  %3350 = vmatpush3.msra.mxu1 %v227_v12  ;;  %v78_v3 = vld [vmem:[%s4795_s0 + $0x218] sm:$0xff]  ;;  %v223_v5 = vld [vmem:[%s4796_s1 + $0x408] sm:$0xff] }
 0x5a2   :  { %3408 = vmatpush3.msra.mxu0 %v81_v51  ;;  %3351 = vmatprep.subr.mxu1 %v226_v20 }
 0x5a3   :  { %3326 = vmatprep.mubr.f32.mxu0 %v1689_v15  ;;  %3409 = vmatprep.subr.mxu0 %v80_v55 }
 0x5a4   :  { %3327 = vmatmul.mubr.f32.gmra.mxu0 %v1690_v32  ;;  %3352 = vmatpush3.msra.mxu1 %v226_v20  ;;  %v77_v32 = vld [vmem:[%s4795_s0 + $0x210] sm:$0xff] }
 0x5a5   :  { %3410 = vmatpush3.msra.mxu0 %v80_v55  ;;  %3353 = vmatprep.subr.mxu1 %v225_v57 }
 0x5a6   :  { %3411 = vmatprep.subr.mxu0 %v79_v59  ;;  %3354 = vmatpush3.msra.mxu1 %v225_v57 }
 0x5a7   :  { %3412 = vmatpush3.msra.mxu0 %v79_v59  ;;  %3355 = vmatprep.subr.mxu1 %v224_v50 }
 0x5a8   :  { %3413 = vmatprep.subr.mxu0 %v78_v3  ;;  %3356 = vmatpush3.msra.mxu1 %v224_v50 }
 0x5a9   :  { %3414 = vmatpush3.msra.mxu0 %v78_v3  ;;  %3357 = vmatprep.subr.mxu1 %v223_v5 }
 0x5aa   :  { %3415 = vmatprep.subr.mxu0 %v77_v32  ;;  %3358 = vmatpush3.msra.mxu1 %v223_v5 }
 0x5ab   :  { %3416 = vmatpush3.msra.mxu0 %v77_v32  ;;  %3417 = vmatprep.mubr.f32.mxu0 %v43_v28 }
 0x5ac   :  { %3359 = vmatprep.subr.mxu1 %v222_v60  ;;  %3418 = vmatmul.mubr.f32.vlgmr.msra.gmra.mxu0 %v44_v21 }
 0x5ad   :  { %3360 = vmatpush3.msra.mxu1 %v222_v60 }
 0x648   :  { %v3307_v8 = vpop.f32.mrf.mxu0 }
 0x649   :  { %v4491_v31 = vadd.f32 %v3307_v8, %v4476_v45  ;;  %v48_v8 = vld [vmem:[%s4795_s0 + $0x128] sm:$0xff] }
 0x64a   :  { %v1761_v27 = vpop.f32.mrf.mxu0 }
 0x64b   :  { %v4500_v0 = vadd.f32 %v1761_v27, %v4476_v45  ;;  %1842 = vrot.lane.b32.xlu1 %v4491_v31, %s3579_s15  ;;  %v51_v27 = vld [vmem:[%s4795_s0 + $0x140] sm:$0xff] }
 0x64c   :  { %v3310_v11 = vpop.f32.mrf.mxu0 }
 0x64d   :  { %v4511_v34 = vadd.f32 %v3310_v11, %v4476_v45  ;;  %1840 = vrot.lane.b32.xlu0 %v4500_v0, %s3579_s15  ;;  %v54_v11 = vld [vmem:[%s4795_s0 + $0x158] sm:$0xff] }
 0x64e   :  { %v1771_v40 = vpop.f32.mrf.mxu0 }
 0x64f   :  { %v4516_v54 = vadd.f32 %v1771_v40, %v4476_v45  ;;  %1846 = vrot.lane.b32.xlu1 %v4511_v34, %s3579_s15  ;;  %v57_v40 = vld [vmem:[%s4795_s0 + $0x170] sm:$0xff] }
 0x650   :  { %v3313_v4 = vpop.f32.mrf.mxu0 }
 0x651   :  { %v4527_v52 = vadd.f32 %v3313_v4, %v4476_v45  ;;  %1844 = vrot.lane.b32.xlu0 %v4516_v54, %s3579_s15 }
 0x652   :  { %v1781_v63 = vpop.f32.mrf.mxu0 }
 0x653   :  { %v4538_v18 = vadd.f32 %v1781_v63, %v4476_v45  ;;  %1850 = vrot.lane.b32.xlu1 %v4527_v52, %s3579_s15 }
 0x654   :  { %v3316_v10 = vpop.f32.mrf.mxu0 }
 0x655   :  { %v4549_v58 = vadd.f32 %v3316_v10, %v4476_v45  ;;  %1848 = vrot.lane.b32.xlu0 %v4538_v18, %s3579_s15 }
 0x656   :  { %v1791_v46 = vpop.f32.mrf.mxu0 }
 0x657   :  { %v4560_v19 = vadd.f32 %v1791_v46, %v4476_v45  ;;  %1854 = vrot.lane.b32.xlu1 %v4549_v58, %s3579_s15 }
 0x658   :  { %v3319_v37 = vpop.f32.mrf.mxu0 }
 0x659   :  { %v4568_v1 = vadd.f32 %v3319_v37, %v4476_v45  ;;  %1852 = vrot.lane.b32.xlu0 %v4560_v19, %s3579_s15 }
 0x65a   :  { %v1801_v47 = vpop.f32.mrf.mxu0 }
 0x65b   :  { %v4576_v49 = vadd.f32 %v1801_v47, %v4476_v45  ;;  %1858 = vrot.lane.b32.xlu1 %v4568_v1, %s3579_s15 }
 0x65c   :  { %v3322_v43 = vpop.f32.mrf.mxu0 }
 0x65d   :  { %v4587_v30 = vadd.f32 %v3322_v43, %v4476_v45  ;;  %1856 = vrot.lane.b32.xlu0 %v4576_v49, %s3579_s15 }
 0x65e   :  { %v1811_v53 = vpop.f32.mrf.mxu0 }
 0x65f   :  { %v4598_v26 = vadd.f32 %v1811_v53, %v4476_v45  ;;  %1862 = vrot.lane.b32.xlu1 %v4587_v30, %s3579_s15 }
 0x660   :  { %v3325_v14 = vpop.f32.mrf.mxu0 }
 0x661   :  { %v4606_v61 = vadd.f32 %v3325_v14, %v4476_v45  ;;  %1860 = vrot.lane.b32.xlu0 %v4598_v26, %s3579_s15 }
 0x662   :  { %v1821_v24 = vpop.f32.mrf.mxu0 }
 0x663   :  { %v4614_v2 = vadd.f32 %v1821_v24, %v4476_v45  ;;  %1866 = vrot.lane.b32.xlu1 %v4606_v61, %s3579_s15 }
 0x664   :  { %v3328_v16 = vpop.f32.mrf.mxu0 }
 0x665   :  { %v4625_v7 = vadd.f32 %v3328_v16, %v4476_v45  ;;  %1864 = vrot.lane.b32.xlu0 %v4614_v2, %s3579_s15 }
 0x666   :  { %v1831_v15 = vpop.f32.mrf.mxu0 }
 0x667   :  { %v4636_v33 = vadd.f32 %v1831_v15, %v4476_v45  ;;  %1870 = vrot.lane.b32.xlu1 %v4625_v7, %s3579_s15  ;;  %v45_v45 = vld [vmem:[%s4795_s0 + $0x110] sm:$0xff] }
 0x668   :  { %3420 = vmatprep.mubr.f32.mxu0 %v45_v45 }
 0x669   :  { %1868 = vrot.lane.b32.xlu0 %v4636_v33, %s3579_s15  ;;  %3421 = vmatmul.mubr.f32.gmra.mxu0 %v46_v17 }
 0x66a   :  { %3423 = vmatprep.mubr.f32.mxu0 %v47_v22 }
 0x66d   :  { %3424 = vmatmul.mubr.f32.gmra.mxu0 %v48_v8 }
 0x66e   :  { %3426 = vmatprep.mubr.f32.mxu0 %v49_v25 }
 0x671   :  { %3427 = vmatmul.mubr.f32.gmra.mxu0 %v50_v29 }
 0x672   :  { %3429 = vmatprep.mubr.f32.mxu0 %v51_v27 }
 0x675   :  { %3430 = vmatmul.mubr.f32.gmra.mxu0 %v52_v48 }
 0x676   :  { %3432 = vmatprep.mubr.f32.mxu0 %v53_v23 }
 0x679   :  { %3433 = vmatmul.mubr.f32.gmra.mxu0 %v54_v11 }
 0x67a   :  { %3435 = vmatprep.mubr.f32.mxu0 %v55_v62 }
 0x67d   :  { %3436 = vmatmul.mubr.f32.gmra.mxu0 %v56_v13 }
 0x67e   :  { %3438 = vmatprep.mubr.f32.mxu0 %v57_v40 }
 0x681   :  { %3439 = vmatmul.mubr.f32.gmra.mxu0 %v58_v35 }
 0x6bd   :  { %v1843_v42 = vpop.permute.xlu1 %1842 }
 0x6be   :  { %v1873_v4 = vsub.f32 0.0, %v1843_v42 }
 0x6bf   :  { %v1841_v44 = vpop.permute.xlu0 %1840 }
 0x6c0   :  { %v1890_v36 = vmul.f32 1.442695, %v1873_v4  ;;  %v1872_v63 = vsub.f32 0.0, %v1841_v44 }
 0x6c1   :  { %v1847_v56 = vpop.permute.xlu1 %1846 }
 0x6c2   :  { %3514 = vpow2.f32 %v1890_v36  ;;  %v1888_v38 = vmul.f32 1.442695, %v1872_v63  ;;  %v1875_v10 = vsub.f32 0.0, %v1847_v56 }
 0x6c3   :  { %v1845_v9 = vpop.permute.xlu0 %1844 }
 0x6c4   :  { %3516 = vpow2.f32 %v1888_v38  ;;  %v1894_v46 = vmul.f32 1.442695, %v1875_v10  ;;  %v1874_v6 = vsub.f32 0.0, %v1845_v9 }
 0x6c5   :  { %v1851_v37 = vpop.permute.xlu1 %1850 }
 0x6c6   :  { %3518 = vpow2.f32 %v1894_v46  ;;  %v1892_v39 = vmul.f32 1.442695, %v1874_v6  ;;  %v1877_v41 = vsub.f32 0.0, %v1851_v37 }
 0x6c7   :  { %v1849_v47 = vpop.permute.xlu0 %1848 }
 0x6c8   :  { %3520 = vpow2.f32 %v1892_v39  ;;  %v1898_v12 = vmul.f32 1.442695, %v1877_v41  ;;  %v1876_v51 = vsub.f32 0.0, %v1849_v47 }
 0x6c9   :  { %v1855_v43 = vpop.permute.xlu1 %1854 }
 0x6ca   :  { %3522 = vpow2.f32 %v1898_v12  ;;  %v1896_v20 = vmul.f32 1.442695, %v1876_v51  ;;  %v1879_v53 = vsub.f32 0.0, %v1855_v43 }
 0x6cb   :  { %v1853_v55 = vpop.permute.xlu0 %1852 }
 0x6cc   :  { %3524 = vpow2.f32 %v1896_v20  ;;  %v1902_v14 = vmul.f32 1.442695, %v1879_v53  ;;  %v1878_v57 = vsub.f32 0.0, %v1853_v55 }
 0x6cd   :  { %v1859_v59 = vpop.permute.xlu1 %1858 }
 0x6ce   :  { %3526 = vpow2.f32 %v1902_v14  ;;  %v1900_v24 = vmul.f32 1.442695, %v1878_v57  ;;  %v1881_v50 = vsub.f32 0.0, %v1859_v59 }
 0x6cf   :  { %v3515_v3 = vpop.eup %3514  ;;  %v1857_v16 = vpop.permute.xlu0 %1856 }
 0x6d0   :  { %v1921_v5 = vadd.f32 1.0, %v3515_v3  ;;  %3528 = vpow2.f32 %v1900_v24  ;;  %v1906_v15 = vmul.f32 1.442695, %v1881_v50  ;;  %v1880_v32 = vsub.f32 0.0, %v1857_v16 }
 0x6d1   :  { %v3517_v28 = vpop.eup %3516  ;;  %v1863_v60 = vpop.permute.xlu1 %1862 }
 0x6d2   :  { %3530 = vrcp.f32 %v1921_v5  ;;  %v1920_v21 = vadd.f32 1.0, %v3517_v28  ;;  %v1904_v45 = vmul.f32 1.442695, %v1880_v32  ;;  %v1883_v17 = vsub.f32 0.0, %v1863_v60 }
 0x6d3   :  { %v3519_v22 = vpop.eup %3518  ;;  %3532 = vpow2.f32 %v1906_v15  ;;  %v1861_v8 = vpop.permute.xlu0 %1860 }
 0x6d4   :  { %3534 = vrcp.f32 %v1920_v21  ;;  %v1923_v25 = vadd.f32 1.0, %v3519_v22  ;;  %v1910_v29 = vmul.f32 1.442695, %v1883_v17  ;;  %v1882_v27 = vsub.f32 0.0, %v1861_v8 }
 0x6d5   :  { %v3521_v48 = vpop.eup %3520  ;;  %3536 = vpow2.f32 %v1904_v45  ;;  %v1867_v23 = vpop.permute.xlu1 %1866 }
 0x6d6   :  { %3538 = vrcp.f32 %v1923_v25  ;;  %v1922_v11 = vadd.f32 1.0, %v3521_v48  ;;  %v1908_v62 = vmul.f32 1.442695, %v1882_v27  ;;  %v1885_v13 = vsub.f32 0.0, %v1867_v23 }
 0x6d7   :  { %v3523_v40 = vpop.eup %3522  ;;  %3540 = vpow2.f32 %v1910_v29  ;;  %v1865_v35 = vpop.permute.xlu0 %1864 }
 0x6d8   :  { %3542 = vrcp.f32 %v1922_v11  ;;  %v1925_v42 = vadd.f32 1.0, %v3523_v40  ;;  %v1914_v4 = vmul.f32 1.442695, %v1885_v13  ;;  %v1884_v44 = vsub.f32 0.0, %v1865_v35 }
 0x6d9   :  { %v3525_v36 = vpop.eup %3524  ;;  %3544 = vpow2.f32 %v1908_v62  ;;  %v1871_v63 = vpop.permute.xlu1 %1870 }
 0x6da   :  { %3546 = vrcp.f32 %v1925_v42  ;;  %v1924_v56 = vadd.f32 1.0, %v3525_v36  ;;  %v1912_v38 = vmul.f32 1.442695, %v1884_v44  ;;  %v1887_v10 = vsub.f32 0.0, %v1871_v63 }
 0x6db   :  { %v3527_v9 = vpop.eup %3526  ;;  %3548 = vpow2.f32 %v1914_v4  ;;  %v1869_v46 = vpop.permute.xlu0 %1868 }
 0x6dc   :  { %3550 = vrcp.f32 %v1924_v56  ;;  %v1927_v6 = vadd.f32 1.0, %v3527_v9  ;;  %v1918_v37 = vmul.f32 1.442695, %v1887_v10  ;;  %v1886_v39 = vsub.f32 0.0, %v1869_v46 }
 0x6dd   :  { %v3529_v41 = vpop.eup %3528  ;;  %3552 = vpow2.f32 %v1912_v38 }
 0x6de   :  { %3554 = vrcp.f32 %v1927_v6  ;;  %v1926_v47 = vadd.f32 1.0, %v3529_v41  ;;  %v1916_v12 = vmul.f32 1.442695, %v1886_v39 }
 0x6df   :  { %v3531_v51 = vpop.eup %3530  ;;  %3556 = vpow2.f32 %v1918_v37 }
 0x6e0   :  { %v3533_v43 = vpop.eup %3532  ;;  %3558 = vrcp.f32 %v1926_v47  ;;  %v1969_v24 = vmul.f32 %v3531_v51, %v4491_v31 }
 0x6e1   :  { %v3535_v20 = vpop.eup %3534  ;;  %v1929_v53 = vadd.f32 1.0, %v3533_v43  ;;  %3560 = vpow2.f32 %v1916_v12 }
 0x6e2   :  { %v3537_v55 = vpop.eup %3536  ;;  %v1968_v14 = vmul.f32 %v3535_v20, %v4500_v0 }
 0x6e3   :  { %v3539_v57 = vpop.eup %3538  ;;  %v1928_v59 = vadd.f32 1.0, %v3537_v55  ;;  %3562 = vrcp.f32 %v1929_v53 }
 0x6e4   :  { %v3541_v50 = vpop.eup %3540  ;;  %3361 = vmatprep.mubr.f32.mxu1 %v1968_v14  ;;  %v1971_v60 = vmul.f32 %v3539_v57, %v4511_v34 }
 0x6e5   :  { %v3543_v3 = vpop.eup %3542  ;;  %3564 = vrcp.f32 %v1928_v59  ;;  %v1931_v16 = vadd.f32 1.0, %v3541_v50  ;;  %3362 = vmatmul.mubr.f32.vlgmr.msra.gmra.mxu1 %v1969_v24 }
 0x6e6   :  { %v3545_v5 = vpop.eup %3544  ;;  %v1970_v15 = vmul.f32 %v3543_v3, %v4516_v54 }
 0x6e7   :  { %v3547_v32 = vpop.eup %3546  ;;  %v1930_v28 = vadd.f32 1.0, %v3545_v5  ;;  %3566 = vrcp.f32 %v1931_v16 }
 0x6e8   :  { %v3549_v21 = vpop.eup %3548  ;;  %3364 = vmatprep.mubr.f32.mxu1 %v1970_v15  ;;  %v1973_v25 = vmul.f32 %v3547_v32, %v4527_v52 }
 0x6e9   :  { %v3551_v0 = vpop.eup %3550  ;;  %3568 = vrcp.f32 %v1930_v28  ;;  %v1933_v31 = vadd.f32 1.0, %v3549_v21  ;;  %3365 = vmatmul.mubr.f32.gmra.mxu1 %v1971_v60 }
 0x6ea   :  { %v3553_v45 = vpop.eup %3552  ;;  %v1972_v17 = vmul.f32 %v3551_v0, %v4538_v18 }
 0x6eb   :  { %v3555_v22 = vpop.eup %3554  ;;  %v1932_v8 = vadd.f32 1.0, %v3553_v45  ;;  %3570 = vrcp.f32 %v1933_v31 }
 0x6ec   :  { %v3557_v29 = vpop.eup %3556  ;;  %3367 = vmatprep.mubr.f32.mxu1 %v1972_v17  ;;  %v1975_v11 = vmul.f32 %v3555_v22, %v4549_v58 }
 0x6ed   :  { %v3559_v54 = vpop.eup %3558  ;;  %3572 = vrcp.f32 %v1932_v8  ;;  %v1935_v34 = vadd.f32 1.0, %v3557_v29  ;;  %3368 = vmatmul.mubr.f32.gmra.mxu1 %v1973_v25 }
 0x6ee   :  { %v3561_v27 = vpop.eup %3560  ;;  %v1974_v48 = vmul.f32 %v3559_v54, %v4560_v19 }
 0x6ef   :  { %v1934_v23 = vadd.f32 1.0, %v3561_v27  ;;  %3574 = vrcp.f32 %v1935_v34 }
 0x6f0   :  { %3370 = vmatprep.mubr.f32.mxu1 %v1974_v48  ;;  %v3563_v18 = vpop.eup %3562 }
 0x6f1   :  { %3576 = vrcp.f32 %v1934_v23  ;;  %3371 = vmatmul.mubr.f32.gmra.mxu1 %v1975_v11  ;;  %v1977_v13 = vmul.f32 %v3563_v18, %v4568_v1 }
 0x6f2   :  { %v3565_v62 = vpop.eup %3564 }
 0x6f3   :  { %v1976_v52 = vmul.f32 %v3565_v62, %v4576_v49  ;;  %v60_v62 = vld [vmem:[%s4795_s0 + $0x188] sm:$0xff] }
 0x6f4   :  { %v3567_v40 = vpop.eup %3566 }
 0x6f5   :  { %3373 = vmatprep.mubr.f32.mxu1 %v1976_v52  ;;  %v1979_v19 = vmul.f32 %v3567_v40, %v4587_v30  ;;  %v4713_v30 = vpop.f32.mrf.mxu0  ;;  %v59_v52 = vld [vmem:[%s4795_s0 + $0x180] sm:$0xff] }
 0x6f6   :  { %v3569_v35 = vpop.eup %3568  ;;  %3374 = vmatmul.mubr.f32.gmra.mxu1 %v1977_v13 }
 0x6f7   :  { %v1978_v42 = vmul.f32 %v3569_v35, %v4598_v26  ;;  %v3580_v26 = vmov 0.0  }
 0x6f8   :  { %v3571_v4 = vpop.eup %3570  ;;  %3441 = vmatprep.subr.mxu1 %v3580_v26  ;;  %3476 = vmatprep.subr.mxu0 %v3580_v26 }
 0x6f9   :  { %3376 = vmatprep.mubr.f32.mxu1 %v1978_v42  ;;  %v1981_v36 = vmul.f32 %v3571_v4, %v4606_v61  ;;  %3508 = vmatprep.mubr.msk.f32.mxu0 %vm3581_vm0, %v3580_v26  ;;  %v4715_v61 = vpop.f32.mrf.mxu0 }
 0x6fa   :  { %v3573_v58 = vpop.eup %3572  ;;  %3377 = vmatmul.mubr.f32.gmra.mxu1 %v1979_v19 }
 0x6fb   :  { %v1980_v44 = vmul.f32 %v3573_v58, %v4614_v2  ;;  %v93_v58 = vld [vmem:[%s4795_s0 + $0x290] sm:$0xff] }
 0x6fc   :  { %v3575_v63 = vpop.eup %3574 }
 0x6fd   :  { %3379 = vmatprep.mubr.f32.mxu1 %v1980_v44  ;;  %v1983_v56 = vmul.f32 %v3575_v63, %v4625_v7 }
 0x6fe   :  { %v3577_v49 = vpop.eup %3576  ;;  %3380 = vmatmul.mubr.f32.gmra.mxu1 %v1981_v36 }
 0x6ff   :  { %v1982_v1 = vmul.f32 %v3577_v49, %v4636_v33 }
 0x701   :  { %3382 = vmatprep.mubr.f32.mxu1 %v1982_v1 }
 0x702   :  { %3383 = vmatmul.mubr.f32.gmra.mxu1 %v1983_v56 }
 0x703   :  { %3473 = vmatprep.mubr.msk.f32.mxu1 %vm3581_vm0, %v3580_v26 }
 0x729   :  { %v4717_v2 = vpop.f32.mrf.mxu0 }
 0x72b   :  { %v4719_v33 = vpop.f32.mrf.mxu0 }
 0x72d   :  { %v4721_v7 = vpop.f32.mrf.mxu0 }
 0x72f   :  { %v4723_v38 = vpop.f32.mrf.mxu0 }
 0x731   :  { %v3428_v10 = vpop.f32.mrf.mxu0 }
 0x733   :  { %v4725_v9 = vpop.f32.mrf.mxu0 }
 0x735   :  { %v3431_v37 = vpop.f32.mrf.mxu0 }
 0x737   :  { %v2235_v47 = vpop.f32.mrf.mxu0 }
 0x739   :  { %v3434_v43 = vpop.f32.mrf.mxu0 }
 0x73b   :  { %v2245_v55 = vpop.f32.mrf.mxu0 }
 0x73d   :  { %v3437_v59 = vpop.f32.mrf.mxu0 }
 0x73f   :  { %v2255_v3 = vpop.f32.mrf.mxu0 }
 0x741   :  { %v3440_v15 = vpop.f32.mrf.mxu0 }
 0x743   :  { %v2265_v60 = vpop.f32.mrf.mxu0 }
 0x7a5   :  { %v4727_v46 = vpop.f32.mrf.mxu1 }
 0x7a6   :  { %v2275_v11 = vmul.f32 %v4713_v30, %v4727_v46 }
 0x7a7   :  { %v4729_v6 = vpop.f32.mrf.mxu1 }
 0x7a8   :  { %v2274_v18 = vmul.f32 %v4715_v61, %v4729_v6 }
 0x7a9   :  { %v4731_v39 = vpop.f32.mrf.mxu1 }
 0x7aa   :  { %v2277_v48 = vmul.f32 %v4717_v2, %v4731_v39 }
 0x7ab   :  { %v4733_v41 = vpop.f32.mrf.mxu1 }
 0x7ac   :  { %v2276_v23 = vmul.f32 %v4719_v33, %v4733_v41 }
 0x7ad   :  { %v4735_v12 = vpop.f32.mrf.mxu1 }
 0x7ae   :  { %v2279_v34 = vmul.f32 %v4721_v7, %v4735_v12 }
 0x7af   :  { %v4737_v51 = vpop.f32.mrf.mxu1 }
 0x7b0   :  { %v2278_v27 = vmul.f32 %v4723_v38, %v4737_v51 }
 0x7b1   :  { %v3372_v20 = vpop.f32.mrf.mxu1 }
 0x7b2   :  { %v2281_v29 = vmul.f32 %v3428_v10, %v3372_v20 }
 0x7b3   :  { %v2080_v53 = vpop.f32.mrf.mxu1 }
 0x7b4   :  { %v2280_v54 = vmul.f32 %v4725_v9, %v2080_v53 }
 0x7b6   :  { %v3375_v14 = vpop.f32.mrf.mxu1 }
 0x7b7   :  { %v2283_v8 = vmul.f32 %v3431_v37, %v3375_v14 }
 0x7b8   :  { %v2090_v57 = vpop.f32.mrf.mxu1 }
 0x7b9   :  { %v2282_v25 = vmul.f32 %v2235_v47, %v2090_v57 }
 0x7ba   :  { %v3378_v24 = vpop.f32.mrf.mxu1 }
 0x7bb   :  { %v2285_v17 = vmul.f32 %v3434_v43, %v3378_v24 }
 0x7bc   :  { %v2100_v50 = vpop.f32.mrf.mxu1 }
 0x7bd   :  { %v2284_v22 = vmul.f32 %v2245_v55, %v2100_v50 }
 0x7be   :  { %v3381_v16 = vpop.f32.mrf.mxu1 }
 0x7bf   :  { %v2287_v31 = vmul.f32 %v3437_v59, %v3381_v16 }
 0x7c0   :  { %v2110_v5 = vpop.f32.mrf.mxu1 }
 0x7c1   :  { %v2286_v45 = vmul.f32 %v2255_v3, %v2110_v5 }
 0x7c2   :  { %v3384_v32 = vpop.f32.mrf.mxu1 }
 0x7c3   :  { %v2289_v28 = vmul.f32 %v3440_v15, %v3384_v32 }
 0x7c4   :  { %v2120_v21 = vpop.f32.mrf.mxu1 }
 0x7c5   :  { %v2288_v0 = vmul.f32 %v2265_v60, %v2120_v21  ;;  %3442 = vmatpush3.msra.mxu1 %v2289_v28  ;;  %3477 = vmatpush3.msra.mxu0 %v2289_v28 }
 0x7c6   :  { %3443 = vmatprep.subr.mxu1 %v3580_v26  ;;  %3478 = vmatprep.subr.mxu0 %v3580_v26 }
 0x7c7   :  { %3444 = vmatpush3.msra.mxu1 %v2288_v0  ;;  %3479 = vmatpush3.msra.mxu0 %v2288_v0 }
 0x7c8   :  { %3445 = vmatprep.subr.mxu1 %v3580_v26  ;;  %3480 = vmatprep.subr.mxu0 %v3580_v26 }
 0x7c9   :  { %3446 = vmatpush3.msra.mxu1 %v2287_v31  ;;  %3481 = vmatpush3.msra.mxu0 %v2287_v31 }
 0x7ca   :  { %3447 = vmatprep.subr.mxu1 %v3580_v26  ;;  %3482 = vmatprep.subr.mxu0 %v3580_v26 }
 0x7cb   :  { %3448 = vmatpush3.msra.mxu1 %v2286_v45  ;;  %3483 = vmatpush3.msra.mxu0 %v2286_v45 }
 0x7cc   :  { %3449 = vmatprep.subr.mxu1 %v3580_v26  ;;  %3484 = vmatprep.subr.mxu0 %v3580_v26 }
 0x7cd   :  { %3450 = vmatpush3.msra.mxu1 %v2285_v17  ;;  %3485 = vmatpush3.msra.mxu0 %v2285_v17 }
 0x7ce   :  { %3451 = vmatprep.subr.mxu1 %v3580_v26  ;;  %3486 = vmatprep.subr.mxu0 %v3580_v26 }
 0x7cf   :  { %3452 = vmatpush3.msra.mxu1 %v2284_v22  ;;  %3487 = vmatpush3.msra.mxu0 %v2284_v22 }
 0x7d0   :  { %3453 = vmatprep.subr.mxu1 %v3580_v26  ;;  %3488 = vmatprep.subr.mxu0 %v3580_v26 }
 0x7d1   :  { %3454 = vmatpush3.msra.mxu1 %v2283_v8  ;;  %3489 = vmatpush3.msra.mxu0 %v2283_v8 }
 0x7d2   :  { %3455 = vmatprep.subr.mxu1 %v3580_v26  ;;  %3490 = vmatprep.subr.mxu0 %v3580_v26 }
 0x7d3   :  { %3456 = vmatpush3.msra.mxu1 %v2282_v25  ;;  %3491 = vmatpush3.msra.mxu0 %v2282_v25 }
 0x7d4   :  { %3457 = vmatprep.subr.mxu1 %v3580_v26  ;;  %3492 = vmatprep.subr.mxu0 %v3580_v26 }
 0x7d5   :  { %3458 = vmatpush3.msra.mxu1 %v2281_v29  ;;  %3493 = vmatpush3.msra.mxu0 %v2281_v29 }
 0x7d6   :  { %3459 = vmatprep.subr.mxu1 %v3580_v26  ;;  %3494 = vmatprep.subr.mxu0 %v3580_v26 }
 0x7d7   :  { %3460 = vmatpush3.msra.mxu1 %v2280_v54  ;;  %3495 = vmatpush3.msra.mxu0 %v2280_v54 }
 0x7d8   :  { %3461 = vmatprep.subr.mxu1 %v3580_v26  ;;  %3496 = vmatprep.subr.mxu0 %v3580_v26 }
 0x7d9   :  { %3462 = vmatpush3.msra.mxu1 %v2279_v34  ;;  %3497 = vmatpush3.msra.mxu0 %v2279_v34 }
 0x7da   :  { %3463 = vmatprep.subr.mxu1 %v3580_v26  ;;  %3498 = vmatprep.subr.mxu0 %v3580_v26 }
 0x7db   :  { %3464 = vmatpush3.msra.mxu1 %v2278_v27  ;;  %3499 = vmatpush3.msra.mxu0 %v2278_v27 }
 0x7dc   :  { %3465 = vmatprep.subr.mxu1 %v3580_v26  ;;  %3500 = vmatprep.subr.mxu0 %v3580_v26 }
 0x7dd   :  { %3466 = vmatpush3.msra.mxu1 %v2277_v48  ;;  %3501 = vmatpush3.msra.mxu0 %v2277_v48 }
 0x7de   :  { %3467 = vmatprep.subr.mxu1 %v3580_v26  ;;  %3502 = vmatprep.subr.mxu0 %v3580_v26 }
 0x7df   :  { %3468 = vmatpush3.msra.mxu1 %v2276_v23  ;;  %3503 = vmatpush3.msra.mxu0 %v2276_v23 }
 0x7e0   :  { %3469 = vmatprep.subr.mxu1 %v3580_v26  ;;  %3504 = vmatprep.subr.mxu0 %v3580_v26 }
 0x7e1   :  { %3470 = vmatpush3.msra.mxu1 %v2275_v11  ;;  %3505 = vmatpush3.msra.mxu0 %v2275_v11 }
 0x7e2   :  { %3471 = vmatprep.subr.mxu1 %v3580_v26  ;;  %3506 = vmatprep.subr.mxu0 %v3580_v26 }
 0x7e3   :  { %3472 = vmatpush3.msra.mxu1 %v2274_v18  ;;  %3507 = vmatpush3.msra.mxu0 %v2274_v18 }
 0x7e4   :  { %3474 = vmatmul.mubr.f32.vlgmr.msra.gmra.mxu1 %v60_v62  ;;  %3509 = vmatmul.mubr.f32.vlgmr.msra.gmra.mxu0 %v59_v52 }
 0x8a4   :  { %v2356_v13 = vpop.f32.mrf.mxu1  ;;  %v2428_v40 = vpop.f32.mrf.mxu0 }
 0x8a5   :  { %2360 = vrot.lane.b32.xlu0 %v2356_v13, %s3579_s15 }
 0x8a6   :  { %v3475_v35 = vpop.f32.mrf.mxu1  ;;  %v3510_v42 = vpop.f32.mrf.mxu0 }
 0x917   :  { %v2361_v19 = vpop.permute.xlu0 %2360 }
 0x918   :  { %v2429_v4 = vadd.f32 %v2428_v40, %v2361_v19 }
 0x91a   :  { %v2432_v44 = vmul.f32 0.1, %v2429_v4 }
 0x91c   :  { %v2433_v36 = vadd.f32 %v2432_v44, %v93_v58 }
 0x91e   :  { %2434 = vst [vmem:[%s4797_s2] sm:$0xff] %v2433_v36 }

</bundles_post_ra>
